<compile_context>
chip_gen: v6e
topology: v6e:2x2x1
jax: 0.10.0
libtpu: 0.0.40
codegen_flags: <defaults>
</compile_context>

<pallas_src>
import math
from functools import partial

import jax
import jax.numpy as jnp
from jax import lax
from jax.experimental import pallas as pl
from jax.experimental.pallas import tpu as pltpu

COMPUTE_DTYPE = jnp.bfloat16    # MXU operand dtype (f32 accumulation everywhere)
RESIDUAL_DTYPE = jnp.bfloat16   # inter-layer activation handoff dtype
Q_TILE_MAX = 512                # flash-style q-row tile size


# ---------------------------------------------------------------------------
# One-time probe: is single-buffering (pl.Buffered(1)) of grid-constant
# operands supported by this JAX / Mosaic build?  Falls back cleanly if not.
# ---------------------------------------------------------------------------
_SINGLE_BUFFER_OK = None


def _single_buffer_supported():
    global _SINGLE_BUFFER_OK
    if _SINGLE_BUFFER_OK is not None:
        return _SINGLE_BUFFER_OK

    def _probe_kernel(x_ref, w_ref, o_ref):
        o_ref[...] = x_ref[...] + w_ref[...]

    try:
        x = jnp.arange(16 * 128, dtype=jnp.float32).reshape(16, 128)
        w = jnp.ones((8, 128), jnp.float32)
        out = pl.pallas_call(
            _probe_kernel,
            out_shape=jax.ShapeDtypeStruct((16, 128), jnp.float32),
            grid=(2,),
            in_specs=[pl.BlockSpec((8, 128), lambda i: (i, 0)),
                      pl.BlockSpec((8, 128), lambda i: (0, 0),
                                   pipeline_mode=pl.Buffered(1))],
            out_specs=pl.BlockSpec((8, 128), lambda i: (i, 0)),
        )(x, w)
        ref = x + jnp.tile(w, (2, 1))
        _SINGLE_BUFFER_OK = bool(jnp.allclose(out, ref))
    except Exception:
        _SINGLE_BUFFER_OK = False
    return _SINGLE_BUFFER_OK


# ---------------------------------------------------------------------------
# Fused encoder-layer kernel
#   optional PE-add (first layer) + MHA + FFN + 2x post-LayerNorm
#   + optional final Linear(d_hid, 1) (last layer)
# ---------------------------------------------------------------------------
def _encoder_layer_kernel(*refs, nhead, add_pe, final, q_tile):
    idx = 0
    x_ref = refs[idx]; idx += 1
    if add_pe:
        pe_ref = refs[idx]; idx += 1
    (wqkv, bqkv, wo, bo, w1, b1, w2, b2, g1, t1, g2, t2) = refs[idx:idx + 12]
    idx += 12
    if final:
        w_out, b_out = refs[idx:idx + 2]
        idx += 2
    o_ref = refs[idx]

    cdt = COMPUTE_DTYPE
    f32 = jnp.float32

    x = x_ref[0].astype(f32)                       # (S, D) residual stream, f32 math
    if add_pe:
        x = x + pe_ref[...]
    S, D = x.shape
    hd = D // nhead
    scale = 1.0 / math.sqrt(hd)

    # Fused QKV projection for the full sequence (K/V must span all S rows):
    # one (S,D)x(D,3D) bf16 MXU matmul, f32 accumulation, single bias add.
    qkv = jnp.dot(x.astype(cdt), wqkv[...],
                  preferred_element_type=f32) + bqkv[...]          # (S, 3D) f32
    q = (qkv[:, :D] * scale).astype(cdt)           # fold 1/sqrt(hd) into q cast
    k = qkv[:, D:2 * D].astype(cdt)
    v = qkv[:, 2 * D:].astype(cdt)

    # Hoist all weight loads / broadcasts out of the q-tile loop
    # (JAX does not CSE broadcast_in_dim).
    wo_w = wo[...]
    bo_b = bo[...]
    w1_w = w1[...]; b1_b = b1[...]
    w2_w = w2[...]; b2_b = b2[...]
    g1_b = g1[...]; t1_b = t1[...]
    g2_b = g2[...]; t2_b = t2[...]
    if final:
        wout_w = w_out[...]; bout_b = b_out[...]

    # Flash-style loop over q row tiles: score matrices are (tq, S) only, and
    # everything downstream of attention is row-wise so it is done per tile.
    for t0 in range(0, S, q_tile):
        t_end = min(t0 + q_tile, S)
        xt = x[t0:t_end]                           # (tq, D) f32
        qt = q[t0:t_end]                           # (tq, D) bf16

        # Per-head attention accumulated through the output projection:
        #   attn += (softmax(q_h k_h^T) @ v_h) @ wo[h*hd:(h+1)*hd, :]
        # -> lane-dense (tq, D) accumulator, no scratch slab, no masked stores.
        # nhead is small and static, so the Python unroll is acceptable here.
        attn = jnp.zeros((t_end - t0, D), f32)
        for h in range(nhead):
            sl = slice(h * hd, (h + 1) * hd)
            s = lax.dot_general(qt[:, sl], k[:, sl], (((1,), (1,)), ((), ())),
                                preferred_element_type=f32)        # (tq, S)
            s = s - jnp.max(s, axis=-1, keepdims=True)
            p = jnp.exp(s)
            p = p * pl.reciprocal(jnp.sum(p, axis=-1, keepdims=True),
                                  approx=True)
            pv = jnp.dot(p.astype(cdt), v[:, sl],
                         preferred_element_type=f32)               # (tq, hd)
            attn = attn + jnp.dot(pv.astype(cdt), wo_w[sl, :],
                                  preferred_element_type=f32)      # (tq, D)
        attn = attn + bo_b

        # residual + LayerNorm 1 (norm_first=False, i.e. post-norm), f32
        y = xt + attn
        mu = jnp.mean(y, axis=-1, keepdims=True)
        var = jnp.mean(jnp.square(y - mu), axis=-1, keepdims=True)
        y = (y - mu) * lax.rsqrt(var + 1e-5) * g1_b + t1_b

        # feed-forward (dim_feedforward == d_hid in this module), ReLU
        ff = jnp.dot(y.astype(cdt), w1_w, preferred_element_type=f32) + b1_b
        ff = jnp.maximum(ff, 0.0)
        ff = jnp.dot(ff.astype(cdt), w2_w, preferred_element_type=f32) + b2_b

        # residual + LayerNorm 2
        z = y + ff
        mu2 = jnp.mean(z, axis=-1, keepdims=True)
        var2 = jnp.mean(jnp.square(z - mu2), axis=-1, keepdims=True)
        z = (z - mu2) * lax.rsqrt(var2 + 1e-5) * g2_b + t2_b

        if final:
            # Fused Linear(d_hid, 1): (1,D)x(D,tq) -> lane-dense (1, tq) row.
            row = lax.dot_general(wout_w, z, (((1,), (1,)), ((), ())),
                                  preferred_element_type=f32) + bout_b
            o_ref[0, :, t0:t_end] = row
        else:
            o_ref[0, t0:t_end, :] = z.astype(o_ref.dtype)


def _const_spec(a, single_buffer):
    nd = a.ndim
    if single_buffer:
        # weights never change across the batch grid axis -> single buffer
        return pl.BlockSpec(a.shape, lambda b, _nd=nd: (0,) * _nd,
                            pipeline_mode=pl.Buffered(1))
    return pl.BlockSpec(a.shape, lambda b, _nd=nd: (0,) * _nd)


def _vmem_limit_bytes(x, const_inputs, out_shape, q_tile, single_buffer):
    """Explicit scoped-VMEM budget: blocks + weights + intermediates, headroom."""
    _, S, D = x.shape
    act_in = 2 * S * D * x.dtype.itemsize                    # double-buffered x
    act_out = 2 * math.prod(out_shape.shape[1:]) * jnp.dtype(out_shape.dtype).itemsize
    w_bytes = sum(int(a.size) * a.dtype.itemsize for a in const_inputs)
    w_bytes *= 1 if single_buffer else 2
    # in-kernel intermediates: f32 qkv + bf16 q/k/v + per-tile scores / FFN vals
    interm = S * 3 * D * (4 + 2) + q_tile * S * 4 * 2 + q_tile * D * 4 * 8
    est = int(1.5 * (act_in + act_out + w_bytes + interm))
    try:
        cap = int(pltpu.get_tpu_info().vmem_capacity_bytes)   # 128 MiB v5e/v6e, 64 MiB v7x
    except Exception:
        cap = 64 * 1024 * 1024
    return int(min(max(est, 32 * 1024 * 1024), int(0.9 * cap)))


def encoder_layer(x, lp, pe, final_params, nhead):
    """One fused encoder layer.
    pe is not None        => first layer (PE add fused, f32 input).
    final_params not None => last layer (final linear fused, output (B,1,S) f32).
    Otherwise the layer emits a bf16 (B,S,D) residual stream."""
    B, S, D = x.shape
    add_pe = pe is not None
    final = final_params is not None
    q_tile = S if S <= Q_TILE_MAX else Q_TILE_MAX
    single_buffer = _single_buffer_supported()

    weights = [lp["wqkv"], lp["bqkv"], lp["wo"], lp["bo"],
               lp["w1"], lp["b1"], lp["w2"], lp["b2"],
               lp["g1"], lp["t1"], lp["g2"], lp["t2"]]

    const_inputs = []
    if add_pe:
        const_inputs.append(pe)
    const_inputs.extend(weights)
    if final:
        const_inputs.extend(list(final_params))

    inputs = [x] + const_inputs
    in_specs = [pl.BlockSpec((1, S, D), lambda b: (b, 0, 0))]
    in_specs.extend(_const_spec(a, single_buffer) for a in const_inputs)

    if final:
        out_shape = jax.ShapeDtypeStruct((B, 1, S), jnp.float32)
        out_spec = pl.BlockSpec((1, 1, S), lambda b: (b, 0, 0))
        io_alias = {}                               # shapes differ -> no aliasing
    else:
        out_shape = jax.ShapeDtypeStruct((B, S, D), RESIDUAL_DTYPE)
        out_spec = pl.BlockSpec((1, S, D), lambda b: (b, 0, 0))
        # x block is fully overwritten -> reuse its HBM buffer when dtypes match
        io_alias = {0: 0} if x.dtype == RESIDUAL_DTYPE else {}

    vmem_limit = _vmem_limit_bytes(x, const_inputs, out_shape, q_tile, single_buffer)

    return pl.pallas_call(
        partial(_encoder_layer_kernel, nhead=nhead, add_pe=add_pe,
                final=final, q_tile=q_tile),
        out_shape=out_shape,
        grid=(B,),
        in_specs=in_specs,
        out_specs=out_spec,
        input_output_aliases=io_alias,
        compiler_params=pltpu.CompilerParams(
            dimension_semantics=("parallel",),
            vmem_limit_bytes=vmem_limit),
    )(*inputs)


# ---------------------------------------------------------------------------
# Parameter construction (deterministic, synthetic)
# ---------------------------------------------------------------------------
def make_positional_encoding(max_len, d_model):
    position = jnp.arange(max_len, dtype=jnp.float32)[:, None]
    div_term = jnp.exp(jnp.arange(0, d_model, 2, dtype=jnp.float32)
                       * (-math.log(10000.0) / d_model))
    pe = jnp.zeros((max_len, d_model), jnp.float32)
    pe = pe.at[:, 0::2].set(jnp.sin(position * div_term))
    pe = pe.at[:, 1::2].set(jnp.cos(position * div_term))
    return pe


def init_params(key, d_hid, nlayers, max_len=1024, compute_dtype=COMPUTE_DTYPE):
    def dense(k, shape, fan_in):
        bound = 1.0 / math.sqrt(fan_in)
        return jax.random.uniform(k, shape, jnp.float32, -bound, bound)

    layers = []
    for _ in range(nlayers):
        key, *ks = jax.random.split(key, 13)
        wq = dense(ks[0], (d_hid, d_hid), d_hid); bq = dense(ks[1], (1, d_hid), d_hid)
        wk = dense(ks[2], (d_hid, d_hid), d_hid); bk = dense(ks[3], (1, d_hid), d_hid)
        wv = dense(ks[4], (d_hid, d_hid), d_hid); bv = dense(ks[5], (1, d_hid), d_hid)
        lp = dict(
            # fused QKV weight (D, 3D) in bf16; biases stay f32 (added post-acc)
            wqkv=jnp.concatenate([wq, wk, wv], axis=1).astype(compute_dtype),
            bqkv=jnp.concatenate([bq, bk, bv], axis=1),
            wo=dense(ks[6], (d_hid, d_hid), d_hid).astype(compute_dtype),
            bo=dense(ks[7], (1, d_hid), d_hid),
            w1=dense(ks[8], (d_hid, d_hid), d_hid).astype(compute_dtype),
            b1=dense(ks[9], (1, d_hid), d_hid),
            w2=dense(ks[10], (d_hid, d_hid), d_hid).astype(compute_dtype),
            b2=dense(ks[11], (1, d_hid), d_hid),
            g1=jnp.ones((1, d_hid), jnp.float32), t1=jnp.zeros((1, d_hid), jnp.float32),
            g2=jnp.ones((1, d_hid), jnp.float32), t2=jnp.zeros((1, d_hid), jnp.float32),
        )
        layers.append(lp)

    key, kw = jax.random.split(key)
    # mimic TransformerModel.init_weights(): uniform(-0.1, 0.1) weight, zero bias
    w_out = jax.random.uniform(kw, (1, d_hid), jnp.float32, -0.1, 0.1)
    b_out = jnp.zeros((1, 1), jnp.float32)

    return dict(pe=make_positional_encoding(max_len, d_hid),
                layers=layers, w_out=w_out, b_out=b_out)


# ---------------------------------------------------------------------------
# Full forward (Pallas) and a pure-JAX reference mirroring its precision
# ---------------------------------------------------------------------------
@partial(jax.jit, static_argnums=(2,))
def transformer_forward(src, params, nhead):
    # src: (S, B, D) to match the PyTorch module (batch_first=False)
    x = jnp.transpose(src, (1, 0, 2))                     # (B, S, D) f32
    S = x.shape[1]
    pe = params["pe"][:S]
    n = len(params["layers"])
    for i, lp in enumerate(params["layers"]):
        x = encoder_layer(
            x, lp,
            pe if i == 0 else None,
            (params["w_out"], params["b_out"]) if i == n - 1 else None,
            nhead)
    # last layer emitted a lane-dense (B, 1, S) slab -> back to (S, B, 1)
    return jnp.transpose(x, (2, 0, 1))


def _ref_layernorm(x, g, t):
    mu = jnp.mean(x, axis=-1, keepdims=True)
    var = jnp.mean(jnp.square(x - mu), axis=-1, keepdims=True)
    return (x - mu) * lax.rsqrt(var + 1e-5) * g + t


def reference_forward(src, params, nhead):
    """Pure-JAX reference mirroring the kernel's precision choices
    (bf16 matmul operands, f32 accumulation, f32 norm/softmax math,
    bf16 inter-layer residual handoff)."""
    cdt, f32 = COMPUTE_DTYPE, jnp.float32
    x = jnp.transpose(src, (1, 0, 2)).astype(f32)
    B, S, D = x.shape
    hd = D // nhead
    scale = 1.0 / math.sqrt(hd)
    x = x + params["pe"][:S][None]
    n = len(params["layers"])
    for li, p in enumerate(params["layers"]):
        qkv = jnp.einsum("bsd,df->bsf", x.astype(cdt), p["wqkv"],
                         preferred_element_type=f32) + p["bqkv"]
        q = (qkv[..., :D] * scale).astype(cdt).reshape(B, S, nhead, hd)
        k = qkv[..., D:2 * D].astype(cdt).reshape(B, S, nhead, hd)
        v = qkv[..., 2 * D:].astype(cdt).reshape(B, S, nhead, hd)
        s = jnp.einsum("bqhd,bkhd->bhqk", q, k, preferred_element_type=f32)
        a = jax.nn.softmax(s, axis=-1)
        o = jnp.einsum("bhqk,bkhd->bqhd", a.astype(cdt), v,
                       preferred_element_type=f32).reshape(B, S, D)
        o = jnp.einsum("bsd,df->bsf", o.astype(cdt), p["wo"],
                       preferred_element_type=f32) + p["bo"]
        y = _ref_layernorm(x + o, p["g1"], p["t1"])
        f = jnp.maximum(jnp.einsum("bsd,df->bsf", y.astype(cdt), p["w1"],
                                   preferred_element_type=f32) + p["b1"], 0.0)
        f = jnp.einsum("bsd,df->bsf", f.astype(cdt), p["w2"],
                       preferred_element_type=f32) + p["b2"]
        x = _ref_layernorm(y + f, p["g2"], p["t2"])
        if li < n - 1:
            x = x.astype(RESIDUAL_DTYPE).astype(f32)      # mirror bf16 handoff
    out = jnp.einsum("bsd,od->bso", x, params["w_out"],
                     preferred_element_type=f32) + params["b_out"]
    return jnp.transpose(out, (1, 0, 2))


# ---------------------------------------------------------------------------
if __name__ == "__main__":
    S, B, D_HID, NHEAD, NLAYERS = 8, 2, 32, 4, 2
    key = jax.random.PRNGKey(0)
    k_src, k_par = jax.random.split(key)

    src = jax.random.normal(k_src, (S, B, D_HID), jnp.float32)
    params = init_params(k_par, D_HID, NLAYERS)

    _single_buffer_supported()      # resolve the Buffered(1) probe before jit

    out = transformer_forward(src, params, NHEAD)
    out = jax.block_until_ready(out)
    assert out.shape == (S, B, 1)

    # Both paths use bf16 matmul operands + f32 accumulation and the same bf16
    # inter-layer handoff; the only differences are accumulation order and the
    # approximate reciprocal (~1e-4 rel), so 1e-2 tolerance has ample margin.
    ref = reference_forward(src, params, NHEAD)
    assert bool(jnp.allclose(out, ref, atol=1e-2, rtol=1e-2)), "mismatch vs reference"

    print("KERNEL_OK")
</pallas_src>

<mosaic_0001>
module attributes {stable_mosaic.version = 11 : i64} {
  func.func @_probe_kernel(%arg0: i32, %arg1: memref<8x128xf32, #tpu.memory_space<vmem>>, %arg2: memref<8x128xf32, #tpu.memory_space<vmem>>, %arg3: memref<8x128xf32, #tpu.memory_space<vmem>>) attributes {dimension_semantics = [#tpu.dimension_semantics<arbitrary>], iteration_bounds = array<i64: 2>, scalar_prefetch = 0 : i64, scratch_operands = 0 : i64, tpu.core_type = #tpu.core_type<tc>, window_params = [{transform_indices = @transform_0, window_bounds = array<i64: 8, 128>}, {pipeline_mode = #tpu.pipeline_mode<synchronous>, transform_indices = @transform_1, window_bounds = array<i64: 8, 128>}, {transform_indices = @transform_2, window_bounds = array<i64: 8, 128>}]} {
    %c0 = arith.constant 0 : index
    %c0_0 = arith.constant 0 : index
    %0 = vector.load %arg1[%c0, %c0_0] : memref<8x128xf32, #tpu.memory_space<vmem>>, vector<8x128xf32>
    %c0_1 = arith.constant 0 : index
    %c0_2 = arith.constant 0 : index
    %1 = vector.load %arg2[%c0_1, %c0_2] : memref<8x128xf32, #tpu.memory_space<vmem>>, vector<8x128xf32>
    %2 = arith.addf %0, %1 : vector<8x128xf32>
    %c0_3 = arith.constant 0 : index
    %c0_4 = arith.constant 0 : index
    %3 = vector.load %arg3[%c0_3, %c0_4] : memref<8x128xf32, #tpu.memory_space<vmem>>, vector<8x128xf32>
    tpu.vector_store %arg3[%c0_3, %c0_4], %2 {strides = array<i32>} : memref<8x128xf32, #tpu.memory_space<vmem>>, vector<8x128xf32>,
    return
  }
  func.func @transform_0(%arg0: i32) -> (i32, i32) {
    %c0_i32 = arith.constant 0 : i32
    %c0_i32_0 = arith.constant 0 : i32
    return %arg0, %c0_i32 : i32, i32
  }
  func.func @transform_1(%arg0: i32) -> (i32, i32) {
    %c0_i32 = arith.constant 0 : i32
    %c0_i32_0 = arith.constant 0 : i32
    %c0_i32_1 = arith.constant 0 : i32
    return %c0_i32, %c0_i32_0 : i32, i32
  }
  func.func @transform_2(%arg0: i32) -> (i32, i32) {
    %c0_i32 = arith.constant 0 : i32
    %c0_i32_0 = arith.constant 0 : i32
    return %arg0, %c0_i32 : i32, i32
  }
}

module attributes {stable_mosaic.version = 11 : i64} {
  func.func @_encoder_layer_kernel(%arg0: i32, %arg1: memref<1x8x32xbf16, #tpu.memory_space<vmem>>, %arg2: memref<32x96xbf16, #tpu.memory_space<vmem>>, %arg3: memref<1x96xf32, #tpu.memory_space<vmem>>, %arg4: memref<32x32xbf16, #tpu.memory_space<vmem>>, %arg5: memref<1x32xf32, #tpu.memory_space<vmem>>, %arg6: memref<32x32xbf16, #tpu.memory_space<vmem>>, %arg7: memref<1x32xf32, #tpu.memory_space<vmem>>, %arg8: memref<32x32xbf16, #tpu.memory_space<vmem>>, %arg9: memref<1x32xf32, #tpu.memory_space<vmem>>, %arg10: memref<1x32xf32, #tpu.memory_space<vmem>>, %arg11: memref<1x32xf32, #tpu.memory_space<vmem>>, %arg12: memref<1x32xf32, #tpu.memory_space<vmem>>, %arg13: memref<1x32xf32, #tpu.memory_space<vmem>>, %arg14: memref<1x32xf32, #tpu.memory_space<vmem>>, %arg15: memref<1x1xf32, #tpu.memory_space<vmem>>, %arg16: memref<1x1x8xf32, #tpu.memory_space<vmem>>) attributes {dimension_semantics = [#tpu.dimension_semantics<parallel>], iteration_bounds = array<i64: 2>, scalar_prefetch = 0 : i64, scratch_operands = 0 : i64, tpu.core_type = #tpu.core_type<tc>, window_params = [{transform_indices = @transform_0, window_bounds = array<i64: 1, 8, 32>}, {pipeline_mode = #tpu.pipeline_mode<synchronous>, transform_indices = @transform_1, window_bounds = array<i64: 32, 96>}, {pipeline_mode = #tpu.pipeline_mode<synchronous>, transform_indices = @transform_2, window_bounds = array<i64: 1, 96>}, {pipeline_mode = #tpu.pipeline_mode<synchronous>, transform_indices = @transform_3, window_bounds = array<i64: 32, 32>}, {pipeline_mode = #tpu.pipeline_mode<synchronous>, transform_indices = @transform_4, window_bounds = array<i64: 1, 32>}, {pipeline_mode = #tpu.pipeline_mode<synchronous>, transform_indices = @transform_5, window_bounds = array<i64: 32, 32>}, {pipeline_mode = #tpu.pipeline_mode<synchronous>, transform_indices = @transform_6, window_bounds = array<i64: 1, 32>}, {pipeline_mode = #tpu.pipeline_mode<synchronous>, transform_indices = @transform_7, window_bounds = array<i64: 32, 32>}, {pipeline_mode = #tpu.pipeline_mode<synchronous>, transform_indices = @transform_8, window_bounds = array<i64: 1, 32>}, {pipeline_mode = #tpu.pipeline_mode<synchronous>, transform_indices = @transform_9, window_bounds = array<i64: 1, 32>}, {pipeline_mode = #tpu.pipeline_mode<synchronous>, transform_indices = @transform_10, window_bounds = array<i64: 1, 32>}, {pipeline_mode = #tpu.pipeline_mode<synchronous>, transform_indices = @transform_11, window_bounds = array<i64: 1, 32>}, {pipeline_mode = #tpu.pipeline_mode<synchronous>, transform_indices = @transform_12, window_bounds = array<i64: 1, 32>}, {pipeline_mode = #tpu.pipeline_mode<synchronous>, transform_indices = @transform_13, window_bounds = array<i64: 1, 32>}, {pipeline_mode = #tpu.pipeline_mode<synchronous>, transform_indices = @transform_14, window_bounds = array<i64: 1, 1>}, {transform_indices = @transform_15, window_bounds = array<i64: 1, 1, 8>}]} {
    %c0 = arith.constant 0 : index
    %c0_0 = arith.constant 0 : index
    %c0_1 = arith.constant 0 : index
    %0 = vector.load %arg1[%c0, %c0_0, %c0_1] : memref<1x8x32xbf16, #tpu.memory_space<vmem>>, vector<1x8x32xbf16>
    %1 = vector.shape_cast %0 : vector<1x8x32xbf16> to vector<8x32xbf16>
    %2 = arith.extf %1 : vector<8x32xbf16> to vector<8x32xf32>
    %3 = arith.truncf %2 : vector<8x32xf32> to vector<8x32xbf16>
    %c0_2 = arith.constant 0 : index
    %c0_3 = arith.constant 0 : index
    %4 = vector.load %arg2[%c0_2, %c0_3] : memref<32x96xbf16, #tpu.memory_space<vmem>>, vector<32x96xbf16>
    %cst = arith.constant dense<0.000000e+00> : vector<8x96xf32>
    %5 = tpu.matmul %3, %4, %cst {dimension_numbers = #tpu.dot_dimension_numbers<[1], [0], [0], [1], [0, 0, 1, 1], [], []>} : vector<8x32xbf16>, vector<32x96xbf16>, vector<8x96xf32> -> vector<8x96xf32>
    %c0_4 = arith.constant 0 : index
    %c0_5 = arith.constant 0 : index
    %6 = vector.load %arg3[%c0_4, %c0_5] : memref<1x96xf32, #tpu.memory_space<vmem>>, vector<1x96xf32>
    %7 = vector.broadcast %6 : vector<1x96xf32> to vector<8x96xf32>
    %8 = arith.addf %5, %7 : vector<8x96xf32>
    %9 = vector.extract_strided_slice %8 {offsets = [0, 0], sizes = [8, 32], strides = [1, 1]} : vector<8x96xf32> to vector<8x32xf32>
    %cst_6 = arith.constant 0.353553385 : f32
    %10 = vector.broadcast %cst_6 : f32 to vector<8x32xf32>
    %11 = arith.mulf %9, %10 : vector<8x32xf32>
    %12 = arith.truncf %11 : vector<8x32xf32> to vector<8x32xbf16>
    %13 = vector.extract_strided_slice %8 {offsets = [0, 32], sizes = [8, 32], strides = [1, 1]} : vector<8x96xf32> to vector<8x32xf32>
    %14 = arith.truncf %13 : vector<8x32xf32> to vector<8x32xbf16>
    %15 = vector.extract_strided_slice %8 {offsets = [0, 64], sizes = [8, 32], strides = [1, 1]} : vector<8x96xf32> to vector<8x32xf32>
    %16 = arith.truncf %15 : vector<8x32xf32> to vector<8x32xbf16>
    %c0_7 = arith.constant 0 : index
    %c0_8 = arith.constant 0 : index
    %17 = vector.load %arg4[%c0_7, %c0_8] : memref<32x32xbf16, #tpu.memory_space<vmem>>, vector<32x32xbf16>
    %c0_9 = arith.constant 0 : index
    %c0_10 = arith.constant 0 : index
    %18 = vector.load %arg5[%c0_9, %c0_10] : memref<1x32xf32, #tpu.memory_space<vmem>>, vector<1x32xf32>
    %c0_11 = arith.constant 0 : index
    %c0_12 = arith.constant 0 : index
    %19 = vector.load %arg6[%c0_11, %c0_12] : memref<32x32xbf16, #tpu.memory_space<vmem>>, vector<32x32xbf16>
    %c0_13 = arith.constant 0 : index
    %c0_14 = arith.constant 0 : index
    %20 = vector.load %arg7[%c0_13, %c0_14] : memref<1x32xf32, #tpu.memory_space<vmem>>, vector<1x32xf32>
    %c0_15 = arith.constant 0 : index
    %c0_16 = arith.constant 0 : index
    %21 = vector.load %arg8[%c0_15, %c0_16] : memref<32x32xbf16, #tpu.memory_space<vmem>>, vector<32x32xbf16>
    %c0_17 = arith.constant 0 : index
    %c0_18 = arith.constant 0 : index
    %22 = vector.load %arg9[%c0_17, %c0_18] : memref<1x32xf32, #tpu.memory_space<vmem>>, vector<1x32xf32>
    %c0_19 = arith.constant 0 : index
    %c0_20 = arith.constant 0 : index
    %23 = vector.load %arg10[%c0_19, %c0_20] : memref<1x32xf32, #tpu.memory_space<vmem>>, vector<1x32xf32>
    %c0_21 = arith.constant 0 : index
    %c0_22 = arith.constant 0 : index
    %24 = vector.load %arg11[%c0_21, %c0_22] : memref<1x32xf32, #tpu.memory_space<vmem>>, vector<1x32xf32>
    %c0_23 = arith.constant 0 : index
    %c0_24 = arith.constant 0 : index
    %25 = vector.load %arg12[%c0_23, %c0_24] : memref<1x32xf32, #tpu.memory_space<vmem>>, vector<1x32xf32>
    %c0_25 = arith.constant 0 : index
    %c0_26 = arith.constant 0 : index
    %26 = vector.load %arg13[%c0_25, %c0_26] : memref<1x32xf32, #tpu.memory_space<vmem>>, vector<1x32xf32>
    %c0_27 = arith.constant 0 : index
    %c0_28 = arith.constant 0 : index
    %27 = vector.load %arg14[%c0_27, %c0_28] : memref<1x32xf32, #tpu.memory_space<vmem>>, vector<1x32xf32>
    %c0_29 = arith.constant 0 : index
    %c0_30 = arith.constant 0 : index
    %28 = vector.load %arg15[%c0_29, %c0_30] : memref<1x1xf32, #tpu.memory_space<vmem>>, vector<1x1xf32>
    %cst_31 = arith.constant 0.000000e+00 : f32
    %29 = vector.broadcast %cst_31 : f32 to vector<8x32xf32>
    %30 = vector.extract_strided_slice %12 {offsets = [0, 0], sizes = [8, 8], strides = [1, 1]} : vector<8x32xbf16> to vector<8x8xbf16>
    %31 = vector.extract_strided_slice %14 {offsets = [0, 0], sizes = [8, 8], strides = [1, 1]} : vector<8x32xbf16> to vector<8x8xbf16>
    %cst_32 = arith.constant dense<0.000000e+00> : vector<8x8xf32>
    %32 = tpu.matmul %30, %31, %cst_32 {dimension_numbers = #tpu.dot_dimension_numbers<[1], [1], [0], [0], [0, 0, 1, 0], [], []>} : vector<8x8xbf16>, vector<8x8xbf16>, vector<8x8xf32> -> vector<8x8xf32>
    %cst_33 = arith.constant dense<0xFF800000> : vector<8xf32>
    %33 = vector.multi_reduction <maximumf>, %32, %cst_33 [1] : vector<8x8xf32> to vector<8xf32>
    %34 = vector.shape_cast %33 : vector<8xf32> to vector<8x1xf32>
    %35 = vector.broadcast %34 : vector<8x1xf32> to vector<8x8xf32>
    %36 = arith.subf %32, %35 : vector<8x8xf32>
    %37 = math.exp %36 : vector<8x8xf32>
    %cst_34 = arith.constant dense<0.000000e+00> : vector<8xf32>
    %38 = vector.multi_reduction <add>, %37, %cst_34 [1] : vector<8x8xf32> to vector<8xf32>
    %39 = vector.shape_cast %38 : vector<8xf32> to vector<8x1xf32>
    %40 = tpu.reciprocal %39 {approx = true} : vector<8x1xf32> -> vector<8x1xf32>
    %41 = vector.broadcast %40 : vector<8x1xf32> to vector<8x8xf32>
    %42 = arith.mulf %37, %41 : vector<8x8xf32>
    %43 = arith.truncf %42 : vector<8x8xf32> to vector<8x8xbf16>
    %44 = vector.extract_strided_slice %16 {offsets = [0, 0], sizes = [8, 8], strides = [1, 1]} : vector<8x32xbf16> to vector<8x8xbf16>
    %cst_35 = arith.constant dense<0.000000e+00> : vector<8x8xf32>
    %45 = tpu.matmul %43, %44, %cst_35 {dimension_numbers = #tpu.dot_dimension_numbers<[1], [0], [0], [1], [0, 0, 1, 1], [], []>} : vector<8x8xbf16>, vector<8x8xbf16>, vector<8x8xf32> -> vector<8x8xf32>
    %46 = arith.truncf %45 : vector<8x8xf32> to vector<8x8xbf16>
    %47 = vector.extract_strided_slice %17 {offsets = [0, 0], sizes = [8, 32], strides = [1, 1]} : vector<32x32xbf16> to vector<8x32xbf16>
    %cst_36 = arith.constant dense<0.000000e+00> : vector<8x32xf32>
    %48 = tpu.matmul %46, %47, %cst_36 {dimension_numbers = #tpu.dot_dimension_numbers<[1], [0], [0], [1], [0, 0, 1, 1], [], []>} : vector<8x8xbf16>, vector<8x32xbf16>, vector<8x32xf32> -> vector<8x32xf32>
    %49 = arith.addf %29, %48 : vector<8x32xf32>
    %50 = vector.extract_strided_slice %12 {offsets = [0, 8], sizes = [8, 8], strides = [1, 1]} : vector<8x32xbf16> to vector<8x8xbf16>
    %51 = vector.extract_strided_slice %14 {offsets = [0, 8], sizes = [8, 8], strides = [1, 1]} : vector<8x32xbf16> to vector<8x8xbf16>
    %cst_37 = arith.constant dense<0.000000e+00> : vector<8x8xf32>
    %52 = tpu.matmul %50, %51, %cst_37 {dimension_numbers = #tpu.dot_dimension_numbers<[1], [1], [0], [0], [0, 0, 1, 0], [], []>} : vector<8x8xbf16>, vector<8x8xbf16>, vector<8x8xf32> -> vector<8x8xf32>
    %cst_38 = arith.constant dense<0xFF800000> : vector<8xf32>
    %53 = vector.multi_reduction <maximumf>, %52, %cst_38 [1] : vector<8x8xf32> to vector<8xf32>
    %54 = vector.shape_cast %53 : vector<8xf32> to vector<8x1xf32>
    %55 = vector.broadcast %54 : vector<8x1xf32> to vector<8x8xf32>
    %56 = arith.subf %52, %55 : vector<8x8xf32>
    %57 = math.exp %56 : vector<8x8xf32>
    %cst_39 = arith.constant dense<0.000000e+00> : vector<8xf32>
    %58 = vector.multi_reduction <add>, %57, %cst_39 [1] : vector<8x8xf32> to vector<8xf32>
    %59 = vector.shape_cast %58 : vector<8xf32> to vector<8x1xf32>
    %60 = tpu.reciprocal %59 {approx = true} : vector<8x1xf32> -> vector<8x1xf32>
    %61 = vector.broadcast %60 : vector<8x1xf32> to vector<8x8xf32>
    %62 = arith.mulf %57, %61 : vector<8x8xf32>
    %63 = arith.truncf %62 : vector<8x8xf32> to vector<8x8xbf16>
    %64 = vector.extract_strided_slice %16 {offsets = [0, 8], sizes = [8, 8], strides = [1, 1]} : vector<8x32xbf16> to vector<8x8xbf16>
    %cst_40 = arith.constant dense<0.000000e+00> : vector<8x8xf32>
    %65 = tpu.matmul %63, %64, %cst_40 {dimension_numbers = #tpu.dot_dimension_numbers<[1], [0], [0], [1], [0, 0, 1, 1], [], []>} : vector<8x8xbf16>, vector<8x8xbf16>, vector<8x8xf32> -> vector<8x8xf32>
    %66 = arith.truncf %65 : vector<8x8xf32> to vector<8x8xbf16>
    %67 = vector.extract_strided_slice %17 {offsets = [8, 0], sizes = [8, 32], strides = [1, 1]} : vector<32x32xbf16> to vector<8x32xbf16>
    %cst_41 = arith.constant dense<0.000000e+00> : vector<8x32xf32>
    %68 = tpu.matmul %66, %67, %cst_41 {dimension_numbers = #tpu.dot_dimension_numbers<[1], [0], [0], [1], [0, 0, 1, 1], [], []>} : vector<8x8xbf16>, vector<8x32xbf16>, vector<8x32xf32> -> vector<8x32xf32>
    %69 = arith.addf %49, %68 : vector<8x32xf32>
    %70 = vector.extract_strided_slice %12 {offsets = [0, 16], sizes = [8, 8], strides = [1, 1]} : vector<8x32xbf16> to vector<8x8xbf16>
    %71 = vector.extract_strided_slice %14 {offsets = [0, 16], sizes = [8, 8], strides = [1, 1]} : vector<8x32xbf16> to vector<8x8xbf16>
    %cst_42 = arith.constant dense<0.000000e+00> : vector<8x8xf32>
    %72 = tpu.matmul %70, %71, %cst_42 {dimension_numbers = #tpu.dot_dimension_numbers<[1], [1], [0], [0], [0, 0, 1, 0], [], []>} : vector<8x8xbf16>, vector<8x8xbf16>, vector<8x8xf32> -> vector<8x8xf32>
    %cst_43 = arith.constant dense<0xFF800000> : vector<8xf32>
    %73 = vector.multi_reduction <maximumf>, %72, %cst_43 [1] : vector<8x8xf32> to vector<8xf32>
    %74 = vector.shape_cast %73 : vector<8xf32> to vector<8x1xf32>
    %75 = vector.broadcast %74 : vector<8x1xf32> to vector<8x8xf32>
    %76 = arith.subf %72, %75 : vector<8x8xf32>
    %77 = math.exp %76 : vector<8x8xf32>
    %cst_44 = arith.constant dense<0.000000e+00> : vector<8xf32>
    %78 = vector.multi_reduction <add>, %77, %cst_44 [1] : vector<8x8xf32> to vector<8xf32>
    %79 = vector.shape_cast %78 : vector<8xf32> to vector<8x1xf32>
    %80 = tpu.reciprocal %79 {approx = true} : vector<8x1xf32> -> vector<8x1xf32>
    %81 = vector.broadcast %80 : vector<8x1xf32> to vector<8x8xf32>
    %82 = arith.mulf %77, %81 : vector<8x8xf32>
    %83 = arith.truncf %82 : vector<8x8xf32> to vector<8x8xbf16>
    %84 = vector.extract_strided_slice %16 {offsets = [0, 16], sizes = [8, 8], strides = [1, 1]} : vector<8x32xbf16> to vector<8x8xbf16>
    %cst_45 = arith.constant dense<0.000000e+00> : vector<8x8xf32>
    %85 = tpu.matmul %83, %84, %cst_45 {dimension_numbers = #tpu.dot_dimension_numbers<[1], [0], [0], [1], [0, 0, 1, 1], [], []>} : vector<8x8xbf16>, vector<8x8xbf16>, vector<8x8xf32> -> vector<8x8xf32>
    %86 = arith.truncf %85 : vector<8x8xf32> to vector<8x8xbf16>
    %87 = vector.extract_strided_slice %17 {offsets = [16, 0], sizes = [8, 32], strides = [1, 1]} : vector<32x32xbf16> to vector<8x32xbf16>
    %cst_46 = arith.constant dense<0.000000e+00> : vector<8x32xf32>
    %88 = tpu.matmul %86, %87, %cst_46 {dimension_numbers = #tpu.dot_dimension_numbers<[1], [0], [0], [1], [0, 0, 1, 1], [], []>} : vector<8x8xbf16>, vector<8x32xbf16>, vector<8x32xf32> -> vector<8x32xf32>
    %89 = arith.addf %69, %88 : vector<8x32xf32>
    %90 = vector.extract_strided_slice %12 {offsets = [0, 24], sizes = [8, 8], strides = [1, 1]} : vector<8x32xbf16> to vector<8x8xbf16>
    %91 = vector.extract_strided_slice %14 {offsets = [0, 24], sizes = [8, 8], strides = [1, 1]} : vector<8x32xbf16> to vector<8x8xbf16>
    %cst_47 = arith.constant dense<0.000000e+00> : vector<8x8xf32>
    %92 = tpu.matmul %90, %91, %cst_47 {dimension_numbers = #tpu.dot_dimension_numbers<[1], [1], [0], [0], [0, 0, 1, 0], [], []>} : vector<8x8xbf16>, vector<8x8xbf16>, vector<8x8xf32> -> vector<8x8xf32>
    %cst_48 = arith.constant dense<0xFF800000> : vector<8xf32>
    %93 = vector.multi_reduction <maximumf>, %92, %cst_48 [1] : vector<8x8xf32> to vector<8xf32>
    %94 = vector.shape_cast %93 : vector<8xf32> to vector<8x1xf32>
    %95 = vector.broadcast %94 : vector<8x1xf32> to vector<8x8xf32>
    %96 = arith.subf %92, %95 : vector<8x8xf32>
    %97 = math.exp %96 : vector<8x8xf32>
    %cst_49 = arith.constant dense<0.000000e+00> : vector<8xf32>
    %98 = vector.multi_reduction <add>, %97, %cst_49 [1] : vector<8x8xf32> to vector<8xf32>
    %99 = vector.shape_cast %98 : vector<8xf32> to vector<8x1xf32>
    %100 = tpu.reciprocal %99 {approx = true} : vector<8x1xf32> -> vector<8x1xf32>
    %101 = vector.broadcast %100 : vector<8x1xf32> to vector<8x8xf32>
    %102 = arith.mulf %97, %101 : vector<8x8xf32>
    %103 = arith.truncf %102 : vector<8x8xf32> to vector<8x8xbf16>
    %104 = vector.extract_strided_slice %16 {offsets = [0, 24], sizes = [8, 8], strides = [1, 1]} : vector<8x32xbf16> to vector<8x8xbf16>
    %cst_50 = arith.constant dense<0.000000e+00> : vector<8x8xf32>
    %105 = tpu.matmul %103, %104, %cst_50 {dimension_numbers = #tpu.dot_dimension_numbers<[1], [0], [0], [1], [0, 0, 1, 1], [], []>} : vector<8x8xbf16>, vector<8x8xbf16>, vector<8x8xf32> -> vector<8x8xf32>
    %106 = arith.truncf %105 : vector<8x8xf32> to vector<8x8xbf16>
    %107 = vector.extract_strided_slice %17 {offsets = [24, 0], sizes = [8, 32], strides = [1, 1]} : vector<32x32xbf16> to vector<8x32xbf16>
    %cst_51 = arith.constant dense<0.000000e+00> : vector<8x32xf32>
    %108 = tpu.matmul %106, %107, %cst_51 {dimension_numbers = #tpu.dot_dimension_numbers<[1], [0], [0], [1], [0, 0, 1, 1], [], []>} : vector<8x8xbf16>, vector<8x32xbf16>, vector<8x32xf32> -> vector<8x32xf32>
    %109 = arith.addf %89, %108 : vector<8x32xf32>
    %110 = vector.broadcast %18 : vector<1x32xf32> to vector<8x32xf32>
    %111 = arith.addf %109, %110 : vector<8x32xf32>
    %112 = arith.addf %2, %111 : vector<8x32xf32>
    %cst_52 = arith.constant dense<0.000000e+00> : vector<8xf32>
    %113 = vector.multi_reduction <add>, %112, %cst_52 [1] : vector<8x32xf32> to vector<8xf32>
    %114 = vector.shape_cast %113 : vector<8xf32> to vector<8x1xf32>
    %cst_53 = arith.constant 3.200000e+01 : f32
    %115 = vector.broadcast %cst_53 : f32 to vector<8x1xf32>
    %116 = arith.divf %114, %115 : vector<8x1xf32>
    %117 = vector.broadcast %116 : vector<8x1xf32> to vector<8x32xf32>
    %118 = arith.subf %112, %117 : vector<8x32xf32>
    %119 = arith.mulf %118, %118 : vector<8x32xf32>
    %cst_54 = arith.constant dense<0.000000e+00> : vector<8xf32>
    %120 = vector.multi_reduction <add>, %119, %cst_54 [1] : vector<8x32xf32> to vector<8xf32>
    %121 = vector.shape_cast %120 : vector<8xf32> to vector<8x1xf32>
    %cst_55 = arith.constant 3.200000e+01 : f32
    %122 = vector.broadcast %cst_55 : f32 to vector<8x1xf32>
    %123 = arith.divf %121, %122 : vector<8x1xf32>
    %124 = vector.broadcast %116 : vector<8x1xf32> to vector<8x32xf32>
    %125 = arith.subf %112, %124 : vector<8x32xf32>
    %cst_56 = arith.constant 9.99999974E-6 : f32
    %126 = vector.broadcast %cst_56 : f32 to vector<8x1xf32>
    %127 = arith.addf %123, %126 : vector<8x1xf32>
    %128 = math.rsqrt %127 : vector<8x1xf32>
    %129 = vector.broadcast %128 : vector<8x1xf32> to vector<8x32xf32>
    %130 = arith.mulf %125, %129 : vector<8x32xf32>
    %131 = vector.broadcast %23 : vector<1x32xf32> to vector<8x32xf32>
    %132 = arith.mulf %130, %131 : vector<8x32xf32>
    %133 = vector.broadcast %24 : vector<1x32xf32> to vector<8x32xf32>
    %134 = arith.addf %132, %133 : vector<8x32xf32>
    %135 = arith.truncf %134 : vector<8x32xf32> to vector<8x32xbf16>
    %cst_57 = arith.constant dense<0.000000e+00> : vector<8x32xf32>
    %136 = tpu.matmul %135, %19, %cst_57 {dimension_numbers = #tpu.dot_dimension_numbers<[1], [0], [0], [1], [0, 0, 1, 1], [], []>} : vector<8x32xbf16>, vector<32x32xbf16>, vector<8x32xf32> -> vector<8x32xf32>
    %137 = vector.broadcast %20 : vector<1x32xf32> to vector<8x32xf32>
    %138 = arith.addf %136, %137 : vector<8x32xf32>
    %cst_58 = arith.constant 0.000000e+00 : f32
    %139 = vector.broadcast %cst_58 : f32 to vector<8x32xf32>
    %140 = arith.maximumf %138, %139 : vector<8x32xf32>
    %141 = arith.truncf %140 : vector<8x32xf32> to vector<8x32xbf16>
    %cst_59 = arith.constant dense<0.000000e+00> : vector<8x32xf32>
    %142 = tpu.matmul %141, %21, %cst_59 {dimension_numbers = #tpu.dot_dimension_numbers<[1], [0], [0], [1], [0, 0, 1, 1], [], []>} : vector<8x32xbf16>, vector<32x32xbf16>, vector<8x32xf32> -> vector<8x32xf32>
    %143 = vector.broadcast %22 : vector<1x32xf32> to vector<8x32xf32>
    %144 = arith.addf %142, %143 : vector<8x32xf32>
    %145 = arith.addf %134, %144 : vector<8x32xf32>
    %cst_60 = arith.constant dense<0.000000e+00> : vector<8xf32>
    %146 = vector.multi_reduction <add>, %145, %cst_60 [1] : vector<8x32xf32> to vector<8xf32>
    %147 = vector.shape_cast %146 : vector<8xf32> to vector<8x1xf32>
    %cst_61 = arith.constant 3.200000e+01 : f32
    %148 = vector.broadcast %cst_61 : f32 to vector<8x1xf32>
    %149 = arith.divf %147, %148 : vector<8x1xf32>
    %150 = vector.broadcast %149 : vector<8x1xf32> to vector<8x32xf32>
    %151 = arith.subf %145, %150 : vector<8x32xf32>
    %152 = arith.mulf %151, %151 : vector<8x32xf32>
    %cst_62 = arith.constant dense<0.000000e+00> : vector<8xf32>
    %153 = vector.multi_reduction <add>, %152, %cst_62 [1] : vector<8x32xf32> to vector<8xf32>
    %154 = vector.shape_cast %153 : vector<8xf32> to vector<8x1xf32>
    %cst_63 = arith.constant 3.200000e+01 : f32
    %155 = vector.broadcast %cst_63 : f32 to vector<8x1xf32>
    %156 = arith.divf %154, %155 : vector<8x1xf32>
    %157 = vector.broadcast %149 : vector<8x1xf32> to vector<8x32xf32>
    %158 = arith.subf %145, %157 : vector<8x32xf32>
    %cst_64 = arith.constant 9.99999974E-6 : f32
    %159 = vector.broadcast %cst_64 : f32 to vector<8x1xf32>
    %160 = arith.addf %156, %159 : vector<8x1xf32>
    %161 = math.rsqrt %160 : vector<8x1xf32>
    %162 = vector.broadcast %161 : vector<8x1xf32> to vector<8x32xf32>
    %163 = arith.mulf %158, %162 : vector<8x32xf32>
    %164 = vector.broadcast %25 : vector<1x32xf32> to vector<8x32xf32>
    %165 = arith.mulf %163, %164 : vector<8x32xf32>
    %166 = vector.broadcast %26 : vector<1x32xf32> to vector<8x32xf32>
    %167 = arith.addf %165, %166 : vector<8x32xf32>
    %cst_65 = arith.constant dense<0.000000e+00> : vector<1x8xf32>
    %168 = tpu.matmul %27, %167, %cst_65 {dimension_numbers = #tpu.dot_dimension_numbers<[1], [1], [0], [0], [0, 0, 1, 0], [], []>} : vector<1x32xf32>, vector<8x32xf32>, vector<1x8xf32> -> vector<1x8xf32>
    %169 = vector.broadcast %28 : vector<1x1xf32> to vector<1x8xf32>
    %170 = arith.addf %168, %169 : vector<1x8xf32>
    %c0_66 = arith.constant 0 : index
    %c0_67 = arith.constant 0 : index
    %c0_68 = arith.constant 0 : index
    %171 = vector.load %arg16[%c0_66, %c0_67, %c0_68] : memref<1x1x8xf32, #tpu.memory_space<vmem>>, vector<1x1x8xf32>
    %172 = vector.shape_cast %171 : vector<1x1x8xf32> to vector<1x8xf32>
    %173 = vector.shape_cast %170 : vector<1x8xf32> to vector<1x1x8xf32>
    tpu.vector_store %arg16[%c0_66, %c0_67, %c0_68], %173 {strides = array<i32>} : memref<1x1x8xf32, #tpu.memory_space<vmem>>, vector<1x1x8xf32>,
    return
  }
  func.func @transform_0(%arg0: i32) -> (i32, i32, i32) {
    %c0_i32 = arith.constant 0 : i32
    %c0_i32_0 = arith.constant 0 : i32
    %c0_i32_1 = arith.constant 0 : i32
    return %arg0, %c0_i32, %c0_i32_0 : i32, i32, i32
  }
  func.func @transform_1(%arg0: i32) -> (i32, i32) {
    %c0_i32 = arith.constant 0 : i32
    %c0_i32_0 = arith.constant 0 : i32
    %c0_i32_1 = arith.constant 0 : i32
    return %c0_i32, %c0_i32_0 : i32, i32
  }
  func.func @transform_2(%arg0: i32) -> (i32, i32) {
    %c0_i32 = arith.constant 0 : i32
    %c0_i32_0 = arith.constant 0 : i32
    %c0_i32_1 = arith.constant 0 : i32
    return %c0_i32, %c0_i32_0 : i32, i32
  }
  func.func @transform_3(%arg0: i32) -> (i32, i32) {
    %c0_i32 = arith.constant 0 : i32
    %c0_i32_0 = arith.constant 0 : i32
    %c0_i32_1 = arith.constant 0 : i32
    return %c0_i32, %c0_i32_0 : i32, i32
  }
  func.func @transform_4(%arg0: i32) -> (i32, i32) {
    %c0_i32 = arith.constant 0 : i32
    %c0_i32_0 = arith.constant 0 : i32
    %c0_i32_1 = arith.constant 0 : i32
    return %c0_i32, %c0_i32_0 : i32, i32
  }
  func.func @transform_5(%arg0: i32) -> (i32, i32) {
    %c0_i32 = arith.constant 0 : i32
    %c0_i32_0 = arith.constant 0 : i32
    %c0_i32_1 = arith.constant 0 : i32
    return %c0_i32, %c0_i32_0 : i32, i32
  }
  func.func @transform_6(%arg0: i32) -> (i32, i32) {
    %c0_i32 = arith.constant 0 : i32
    %c0_i32_0 = arith.constant 0 : i32
    %c0_i32_1 = arith.constant 0 : i32
    return %c0_i32, %c0_i32_0 : i32, i32
  }
  func.func @transform_7(%arg0: i32) -> (i32, i32) {
    %c0_i32 = arith.constant 0 : i32
    %c0_i32_0 = arith.constant 0 : i32
    %c0_i32_1 = arith.constant 0 : i32
    return %c0_i32, %c0_i32_0 : i32, i32
  }
  func.func @transform_8(%arg0: i32) -> (i32, i32) {
    %c0_i32 = arith.constant 0 : i32
    %c0_i32_0 = arith.constant 0 : i32
    %c0_i32_1 = arith.constant 0 : i32
    return %c0_i32, %c0_i32_0 : i32, i32
  }
  func.func @transform_9(%arg0: i32) -> (i32, i32) {
    %c0_i32 = arith.constant 0 : i32
    %c0_i32_0 = arith.constant 0 : i32
    %c0_i32_1 = arith.constant 0 : i32
    return %c0_i32, %c0_i32_0 : i32, i32
  }
  func.func @transform_10(%arg0: i32) -> (i32, i32) {
    %c0_i32 = arith.constant 0 : i32
    %c0_i32_0 = arith.constant 0 : i32
    %c0_i32_1 = arith.constant 0 : i32
    return %c0_i32, %c0_i32_0 : i32, i32
  }
  func.func @transform_11(%arg0: i32) -> (i32, i32) {
    %c0_i32 = arith.constant 0 : i32
    %c0_i32_0 = arith.constant 0 : i32
    %c0_i32_1 = arith.constant 0 : i32
    return %c0_i32, %c0_i32_0 : i32, i32
  }
  func.func @transform_12(%arg0: i32) -> (i32, i32) {
    %c0_i32 = arith.constant 0 : i32
    %c0_i32_0 = arith.constant 0 : i32
    %c0_i32_1 = arith.constant 0 : i32
    return %c0_i32, %c0_i32_0 : i32, i32
  }
  func.func @transform_13(%arg0: i32) -> (i32, i32) {
    %c0_i32 = arith.constant 0 : i32
    %c0_i32_0 = arith.constant 0 : i32
    %c0_i32_1 = arith.constant 0 : i32
    return %c0_i32, %c0_i32_0 : i32, i32
  }
  func.func @transform_14(%arg0: i32) -> (i32, i32) {
    %c0_i32 = arith.constant 0 : i32
    %c0_i32_0 = arith.constant 0 : i32
    %c0_i32_1 = arith.constant 0 : i32
    return %c0_i32, %c0_i32_0 : i32, i32
  }
  func.func @transform_15(%arg0: i32) -> (i32, i32, i32) {
    %c0_i32 = arith.constant 0 : i32
    %c0_i32_0 = arith.constant 0 : i32
    %c0_i32_1 = arith.constant 0 : i32
    return %arg0, %c0_i32, %c0_i32_0 : i32, i32, i32
  }
}

module attributes {stable_mosaic.version = 11 : i64} {
  func.func @_encoder_layer_kernel(%arg0: i32, %arg1: memref<1x8x32xf32, #tpu.memory_space<vmem>>, %arg2: memref<8x32xf32, #tpu.memory_space<vmem>>, %arg3: memref<32x96xbf16, #tpu.memory_space<vmem>>, %arg4: memref<1x96xf32, #tpu.memory_space<vmem>>, %arg5: memref<32x32xbf16, #tpu.memory_space<vmem>>, %arg6: memref<1x32xf32, #tpu.memory_space<vmem>>, %arg7: memref<32x32xbf16, #tpu.memory_space<vmem>>, %arg8: memref<1x32xf32, #tpu.memory_space<vmem>>, %arg9: memref<32x32xbf16, #tpu.memory_space<vmem>>, %arg10: memref<1x32xf32, #tpu.memory_space<vmem>>, %arg11: memref<1x32xf32, #tpu.memory_space<vmem>>, %arg12: memref<1x32xf32, #tpu.memory_space<vmem>>, %arg13: memref<1x32xf32, #tpu.memory_space<vmem>>, %arg14: memref<1x32xf32, #tpu.memory_space<vmem>>, %arg15: memref<1x8x32xbf16, #tpu.memory_space<vmem>>) attributes {dimension_semantics = [#tpu.dimension_semantics<parallel>], iteration_bounds = array<i64: 2>, scalar_prefetch = 0 : i64, scratch_operands = 0 : i64, tpu.core_type = #tpu.core_type<tc>, window_params = [{transform_indices = @transform_0, window_bounds = array<i64: 1, 8, 32>}, {pipeline_mode = #tpu.pipeline_mode<synchronous>, transform_indices = @transform_1, window_bounds = array<i64: 8, 32>}, {pipeline_mode = #tpu.pipeline_mode<synchronous>, transform_indices = @transform_2, window_bounds = array<i64: 32, 96>}, {pipeline_mode = #tpu.pipeline_mode<synchronous>, transform_indices = @transform_3, window_bounds = array<i64: 1, 96>}, {pipeline_mode = #tpu.pipeline_mode<synchronous>, transform_indices = @transform_4, window_bounds = array<i64: 32, 32>}, {pipeline_mode = #tpu.pipeline_mode<synchronous>, transform_indices = @transform_5, window_bounds = array<i64: 1, 32>}, {pipeline_mode = #tpu.pipeline_mode<synchronous>, transform_indices = @transform_6, window_bounds = array<i64: 32, 32>}, {pipeline_mode = #tpu.pipeline_mode<synchronous>, transform_indices = @transform_7, window_bounds = array<i64: 1, 32>}, {pipeline_mode = #tpu.pipeline_mode<synchronous>, transform_indices = @transform_8, window_bounds = array<i64: 32, 32>}, {pipeline_mode = #tpu.pipeline_mode<synchronous>, transform_indices = @transform_9, window_bounds = array<i64: 1, 32>}, {pipeline_mode = #tpu.pipeline_mode<synchronous>, transform_indices = @transform_10, window_bounds = array<i64: 1, 32>}, {pipeline_mode = #tpu.pipeline_mode<synchronous>, transform_indices = @transform_11, window_bounds = array<i64: 1, 32>}, {pipeline_mode = #tpu.pipeline_mode<synchronous>, transform_indices = @transform_12, window_bounds = array<i64: 1, 32>}, {pipeline_mode = #tpu.pipeline_mode<synchronous>, transform_indices = @transform_13, window_bounds = array<i64: 1, 32>}, {transform_indices = @transform_14, window_bounds = array<i64: 1, 8, 32>}]} {
    %c0 = arith.constant 0 : index
    %c0_0 = arith.constant 0 : index
    %c0_1 = arith.constant 0 : index
    %0 = vector.load %arg1[%c0, %c0_0, %c0_1] : memref<1x8x32xf32, #tpu.memory_space<vmem>>, vector<1x8x32xf32>
    %1 = vector.shape_cast %0 : vector<1x8x32xf32> to vector<8x32xf32>
    %c0_2 = arith.constant 0 : index
    %c0_3 = arith.constant 0 : index
    %2 = vector.load %arg2[%c0_2, %c0_3] : memref<8x32xf32, #tpu.memory_space<vmem>>, vector<8x32xf32>
    %3 = arith.addf %1, %2 : vector<8x32xf32>
    %4 = arith.truncf %3 : vector<8x32xf32> to vector<8x32xbf16>
    %c0_4 = arith.constant 0 : index
    %c0_5 = arith.constant 0 : index
    %5 = vector.load %arg3[%c0_4, %c0_5] : memref<32x96xbf16, #tpu.memory_space<vmem>>, vector<32x96xbf16>
    %cst = arith.constant dense<0.000000e+00> : vector<8x96xf32>
    %6 = tpu.matmul %4, %5, %cst {dimension_numbers = #tpu.dot_dimension_numbers<[1], [0], [0], [1], [0, 0, 1, 1], [], []>} : vector<8x32xbf16>, vector<32x96xbf16>, vector<8x96xf32> -> vector<8x96xf32>
    %c0_6 = arith.constant 0 : index
    %c0_7 = arith.constant 0 : index
    %7 = vector.load %arg4[%c0_6, %c0_7] : memref<1x96xf32, #tpu.memory_space<vmem>>, vector<1x96xf32>
    %8 = vector.broadcast %7 : vector<1x96xf32> to vector<8x96xf32>
    %9 = arith.addf %6, %8 : vector<8x96xf32>
    %10 = vector.extract_strided_slice %9 {offsets = [0, 0], sizes = [8, 32], strides = [1, 1]} : vector<8x96xf32> to vector<8x32xf32>
    %cst_8 = arith.constant 0.353553385 : f32
    %11 = vector.broadcast %cst_8 : f32 to vector<8x32xf32>
    %12 = arith.mulf %10, %11 : vector<8x32xf32>
    %13 = arith.truncf %12 : vector<8x32xf32> to vector<8x32xbf16>
    %14 = vector.extract_strided_slice %9 {offsets = [0, 32], sizes = [8, 32], strides = [1, 1]} : vector<8x96xf32> to vector<8x32xf32>
    %15 = arith.truncf %14 : vector<8x32xf32> to vector<8x32xbf16>
    %16 = vector.extract_strided_slice %9 {offsets = [0, 64], sizes = [8, 32], strides = [1, 1]} : vector<8x96xf32> to vector<8x32xf32>
    %17 = arith.truncf %16 : vector<8x32xf32> to vector<8x32xbf16>
    %c0_9 = arith.constant 0 : index
    %c0_10 = arith.constant 0 : index
    %18 = vector.load %arg5[%c0_9, %c0_10] : memref<32x32xbf16, #tpu.memory_space<vmem>>, vector<32x32xbf16>
    %c0_11 = arith.constant 0 : index
    %c0_12 = arith.constant 0 : index
    %19 = vector.load %arg6[%c0_11, %c0_12] : memref<1x32xf32, #tpu.memory_space<vmem>>, vector<1x32xf32>
    %c0_13 = arith.constant 0 : index
    %c0_14 = arith.constant 0 : index
    %20 = vector.load %arg7[%c0_13, %c0_14] : memref<32x32xbf16, #tpu.memory_space<vmem>>, vector<32x32xbf16>
    %c0_15 = arith.constant 0 : index
    %c0_16 = arith.constant 0 : index
    %21 = vector.load %arg8[%c0_15, %c0_16] : memref<1x32xf32, #tpu.memory_space<vmem>>, vector<1x32xf32>
    %c0_17 = arith.constant 0 : index
    %c0_18 = arith.constant 0 : index
    %22 = vector.load %arg9[%c0_17, %c0_18] : memref<32x32xbf16, #tpu.memory_space<vmem>>, vector<32x32xbf16>
    %c0_19 = arith.constant 0 : index
    %c0_20 = arith.constant 0 : index
    %23 = vector.load %arg10[%c0_19, %c0_20] : memref<1x32xf32, #tpu.memory_space<vmem>>, vector<1x32xf32>
    %c0_21 = arith.constant 0 : index
    %c0_22 = arith.constant 0 : index
    %24 = vector.load %arg11[%c0_21, %c0_22] : memref<1x32xf32, #tpu.memory_space<vmem>>, vector<1x32xf32>
    %c0_23 = arith.constant 0 : index
    %c0_24 = arith.constant 0 : index
    %25 = vector.load %arg12[%c0_23, %c0_24] : memref<1x32xf32, #tpu.memory_space<vmem>>, vector<1x32xf32>
    %c0_25 = arith.constant 0 : index
    %c0_26 = arith.constant 0 : index
    %26 = vector.load %arg13[%c0_25, %c0_26] : memref<1x32xf32, #tpu.memory_space<vmem>>, vector<1x32xf32>
    %c0_27 = arith.constant 0 : index
    %c0_28 = arith.constant 0 : index
    %27 = vector.load %arg14[%c0_27, %c0_28] : memref<1x32xf32, #tpu.memory_space<vmem>>, vector<1x32xf32>
    %cst_29 = arith.constant 0.000000e+00 : f32
    %28 = vector.broadcast %cst_29 : f32 to vector<8x32xf32>
    %29 = vector.extract_strided_slice %13 {offsets = [0, 0], sizes = [8, 8], strides = [1, 1]} : vector<8x32xbf16> to vector<8x8xbf16>
    %30 = vector.extract_strided_slice %15 {offsets = [0, 0], sizes = [8, 8], strides = [1, 1]} : vector<8x32xbf16> to vector<8x8xbf16>
    %cst_30 = arith.constant dense<0.000000e+00> : vector<8x8xf32>
    %31 = tpu.matmul %29, %30, %cst_30 {dimension_numbers = #tpu.dot_dimension_numbers<[1], [1], [0], [0], [0, 0, 1, 0], [], []>} : vector<8x8xbf16>, vector<8x8xbf16>, vector<8x8xf32> -> vector<8x8xf32>
    %cst_31 = arith.constant dense<0xFF800000> : vector<8xf32>
    %32 = vector.multi_reduction <maximumf>, %31, %cst_31 [1] : vector<8x8xf32> to vector<8xf32>
    %33 = vector.shape_cast %32 : vector<8xf32> to vector<8x1xf32>
    %34 = vector.broadcast %33 : vector<8x1xf32> to vector<8x8xf32>
    %35 = arith.subf %31, %34 : vector<8x8xf32>
    %36 = math.exp %35 : vector<8x8xf32>
    %cst_32 = arith.constant dense<0.000000e+00> : vector<8xf32>
    %37 = vector.multi_reduction <add>, %36, %cst_32 [1] : vector<8x8xf32> to vector<8xf32>
    %38 = vector.shape_cast %37 : vector<8xf32> to vector<8x1xf32>
    %39 = tpu.reciprocal %38 {approx = true} : vector<8x1xf32> -> vector<8x1xf32>
    %40 = vector.broadcast %39 : vector<8x1xf32> to vector<8x8xf32>
    %41 = arith.mulf %36, %40 : vector<8x8xf32>
    %42 = arith.truncf %41 : vector<8x8xf32> to vector<8x8xbf16>
    %43 = vector.extract_strided_slice %17 {offsets = [0, 0], sizes = [8, 8], strides = [1, 1]} : vector<8x32xbf16> to vector<8x8xbf16>
    %cst_33 = arith.constant dense<0.000000e+00> : vector<8x8xf32>
    %44 = tpu.matmul %42, %43, %cst_33 {dimension_numbers = #tpu.dot_dimension_numbers<[1], [0], [0], [1], [0, 0, 1, 1], [], []>} : vector<8x8xbf16>, vector<8x8xbf16>, vector<8x8xf32> -> vector<8x8xf32>
    %45 = arith.truncf %44 : vector<8x8xf32> to vector<8x8xbf16>
    %46 = vector.extract_strided_slice %18 {offsets = [0, 0], sizes = [8, 32], strides = [1, 1]} : vector<32x32xbf16> to vector<8x32xbf16>
    %cst_34 = arith.constant dense<0.000000e+00> : vector<8x32xf32>
    %47 = tpu.matmul %45, %46, %cst_34 {dimension_numbers = #tpu.dot_dimension_numbers<[1], [0], [0], [1], [0, 0, 1, 1], [], []>} : vector<8x8xbf16>, vector<8x32xbf16>, vector<8x32xf32> -> vector<8x32xf32>
    %48 = arith.addf %28, %47 : vector<8x32xf32>
    %49 = vector.extract_strided_slice %13 {offsets = [0, 8], sizes = [8, 8], strides = [1, 1]} : vector<8x32xbf16> to vector<8x8xbf16>
    %50 = vector.extract_strided_slice %15 {offsets = [0, 8], sizes = [8, 8], strides = [1, 1]} : vector<8x32xbf16> to vector<8x8xbf16>
    %cst_35 = arith.constant dense<0.000000e+00> : vector<8x8xf32>
    %51 = tpu.matmul %49, %50, %cst_35 {dimension_numbers = #tpu.dot_dimension_numbers<[1], [1], [0], [0], [0, 0, 1, 0], [], []>} : vector<8x8xbf16>, vector<8x8xbf16>, vector<8x8xf32> -> vector<8x8xf32>
    %cst_36 = arith.constant dense<0xFF800000> : vector<8xf32>
    %52 = vector.multi_reduction <maximumf>, %51, %cst_36 [1] : vector<8x8xf32> to vector<8xf32>
    %53 = vector.shape_cast %52 : vector<8xf32> to vector<8x1xf32>
    %54 = vector.broadcast %53 : vector<8x1xf32> to vector<8x8xf32>
    %55 = arith.subf %51, %54 : vector<8x8xf32>
    %56 = math.exp %55 : vector<8x8xf32>
    %cst_37 = arith.constant dense<0.000000e+00> : vector<8xf32>
    %57 = vector.multi_reduction <add>, %56, %cst_37 [1] : vector<8x8xf32> to vector<8xf32>
    %58 = vector.shape_cast %57 : vector<8xf32> to vector<8x1xf32>
    %59 = tpu.reciprocal %58 {approx = true} : vector<8x1xf32> -> vector<8x1xf32>
    %60 = vector.broadcast %59 : vector<8x1xf32> to vector<8x8xf32>
    %61 = arith.mulf %56, %60 : vector<8x8xf32>
    %62 = arith.truncf %61 : vector<8x8xf32> to vector<8x8xbf16>
    %63 = vector.extract_strided_slice %17 {offsets = [0, 8], sizes = [8, 8], strides = [1, 1]} : vector<8x32xbf16> to vector<8x8xbf16>
    %cst_38 = arith.constant dense<0.000000e+00> : vector<8x8xf32>
    %64 = tpu.matmul %62, %63, %cst_38 {dimension_numbers = #tpu.dot_dimension_numbers<[1], [0], [0], [1], [0, 0, 1, 1], [], []>} : vector<8x8xbf16>, vector<8x8xbf16>, vector<8x8xf32> -> vector<8x8xf32>
    %65 = arith.truncf %64 : vector<8x8xf32> to vector<8x8xbf16>
    %66 = vector.extract_strided_slice %18 {offsets = [8, 0], sizes = [8, 32], strides = [1, 1]} : vector<32x32xbf16> to vector<8x32xbf16>
    %cst_39 = arith.constant dense<0.000000e+00> : vector<8x32xf32>
    %67 = tpu.matmul %65, %66, %cst_39 {dimension_numbers = #tpu.dot_dimension_numbers<[1], [0], [0], [1], [0, 0, 1, 1], [], []>} : vector<8x8xbf16>, vector<8x32xbf16>, vector<8x32xf32> -> vector<8x32xf32>
    %68 = arith.addf %48, %67 : vector<8x32xf32>
    %69 = vector.extract_strided_slice %13 {offsets = [0, 16], sizes = [8, 8], strides = [1, 1]} : vector<8x32xbf16> to vector<8x8xbf16>
    %70 = vector.extract_strided_slice %15 {offsets = [0, 16], sizes = [8, 8], strides = [1, 1]} : vector<8x32xbf16> to vector<8x8xbf16>
    %cst_40 = arith.constant dense<0.000000e+00> : vector<8x8xf32>
    %71 = tpu.matmul %69, %70, %cst_40 {dimension_numbers = #tpu.dot_dimension_numbers<[1], [1], [0], [0], [0, 0, 1, 0], [], []>} : vector<8x8xbf16>, vector<8x8xbf16>, vector<8x8xf32> -> vector<8x8xf32>
    %cst_41 = arith.constant dense<0xFF800000> : vector<8xf32>
    %72 = vector.multi_reduction <maximumf>, %71, %cst_41 [1] : vector<8x8xf32> to vector<8xf32>
    %73 = vector.shape_cast %72 : vector<8xf32> to vector<8x1xf32>
    %74 = vector.broadcast %73 : vector<8x1xf32> to vector<8x8xf32>
    %75 = arith.subf %71, %74 : vector<8x8xf32>
    %76 = math.exp %75 : vector<8x8xf32>
    %cst_42 = arith.constant dense<0.000000e+00> : vector<8xf32>
    %77 = vector.multi_reduction <add>, %76, %cst_42 [1] : vector<8x8xf32> to vector<8xf32>
    %78 = vector.shape_cast %77 : vector<8xf32> to vector<8x1xf32>
    %79 = tpu.reciprocal %78 {approx = true} : vector<8x1xf32> -> vector<8x1xf32>
    %80 = vector.broadcast %79 : vector<8x1xf32> to vector<8x8xf32>
    %81 = arith.mulf %76, %80 : vector<8x8xf32>
    %82 = arith.truncf %81 : vector<8x8xf32> to vector<8x8xbf16>
    %83 = vector.extract_strided_slice %17 {offsets = [0, 16], sizes = [8, 8], strides = [1, 1]} : vector<8x32xbf16> to vector<8x8xbf16>
    %cst_43 = arith.constant dense<0.000000e+00> : vector<8x8xf32>
    %84 = tpu.matmul %82, %83, %cst_43 {dimension_numbers = #tpu.dot_dimension_numbers<[1], [0], [0], [1], [0, 0, 1, 1], [], []>} : vector<8x8xbf16>, vector<8x8xbf16>, vector<8x8xf32> -> vector<8x8xf32>
    %85 = arith.truncf %84 : vector<8x8xf32> to vector<8x8xbf16>
    %86 = vector.extract_strided_slice %18 {offsets = [16, 0], sizes = [8, 32], strides = [1, 1]} : vector<32x32xbf16> to vector<8x32xbf16>
    %cst_44 = arith.constant dense<0.000000e+00> : vector<8x32xf32>
    %87 = tpu.matmul %85, %86, %cst_44 {dimension_numbers = #tpu.dot_dimension_numbers<[1], [0], [0], [1], [0, 0, 1, 1], [], []>} : vector<8x8xbf16>, vector<8x32xbf16>, vector<8x32xf32> -> vector<8x32xf32>
    %88 = arith.addf %68, %87 : vector<8x32xf32>
    %89 = vector.extract_strided_slice %13 {offsets = [0, 24], sizes = [8, 8], strides = [1, 1]} : vector<8x32xbf16> to vector<8x8xbf16>
    %90 = vector.extract_strided_slice %15 {offsets = [0, 24], sizes = [8, 8], strides = [1, 1]} : vector<8x32xbf16> to vector<8x8xbf16>
    %cst_45 = arith.constant dense<0.000000e+00> : vector<8x8xf32>
    %91 = tpu.matmul %89, %90, %cst_45 {dimension_numbers = #tpu.dot_dimension_numbers<[1], [1], [0], [0], [0, 0, 1, 0], [], []>} : vector<8x8xbf16>, vector<8x8xbf16>, vector<8x8xf32> -> vector<8x8xf32>
    %cst_46 = arith.constant dense<0xFF800000> : vector<8xf32>
    %92 = vector.multi_reduction <maximumf>, %91, %cst_46 [1] : vector<8x8xf32> to vector<8xf32>
    %93 = vector.shape_cast %92 : vector<8xf32> to vector<8x1xf32>
    %94 = vector.broadcast %93 : vector<8x1xf32> to vector<8x8xf32>
    %95 = arith.subf %91, %94 : vector<8x8xf32>
    %96 = math.exp %95 : vector<8x8xf32>
    %cst_47 = arith.constant dense<0.000000e+00> : vector<8xf32>
    %97 = vector.multi_reduction <add>, %96, %cst_47 [1] : vector<8x8xf32> to vector<8xf32>
    %98 = vector.shape_cast %97 : vector<8xf32> to vector<8x1xf32>
    %99 = tpu.reciprocal %98 {approx = true} : vector<8x1xf32> -> vector<8x1xf32>
    %100 = vector.broadcast %99 : vector<8x1xf32> to vector<8x8xf32>
    %101 = arith.mulf %96, %100 : vector<8x8xf32>
    %102 = arith.truncf %101 : vector<8x8xf32> to vector<8x8xbf16>
    %103 = vector.extract_strided_slice %17 {offsets = [0, 24], sizes = [8, 8], strides = [1, 1]} : vector<8x32xbf16> to vector<8x8xbf16>
    %cst_48 = arith.constant dense<0.000000e+00> : vector<8x8xf32>
    %104 = tpu.matmul %102, %103, %cst_48 {dimension_numbers = #tpu.dot_dimension_numbers<[1], [0], [0], [1], [0, 0, 1, 1], [], []>} : vector<8x8xbf16>, vector<8x8xbf16>, vector<8x8xf32> -> vector<8x8xf32>
    %105 = arith.truncf %104 : vector<8x8xf32> to vector<8x8xbf16>
    %106 = vector.extract_strided_slice %18 {offsets = [24, 0], sizes = [8, 32], strides = [1, 1]} : vector<32x32xbf16> to vector<8x32xbf16>
    %cst_49 = arith.constant dense<0.000000e+00> : vector<8x32xf32>
    %107 = tpu.matmul %105, %106, %cst_49 {dimension_numbers = #tpu.dot_dimension_numbers<[1], [0], [0], [1], [0, 0, 1, 1], [], []>} : vector<8x8xbf16>, vector<8x32xbf16>, vector<8x32xf32> -> vector<8x32xf32>
    %108 = arith.addf %88, %107 : vector<8x32xf32>
    %109 = vector.broadcast %19 : vector<1x32xf32> to vector<8x32xf32>
    %110 = arith.addf %108, %109 : vector<8x32xf32>
    %111 = arith.addf %3, %110 : vector<8x32xf32>
    %cst_50 = arith.constant dense<0.000000e+00> : vector<8xf32>
    %112 = vector.multi_reduction <add>, %111, %cst_50 [1] : vector<8x32xf32> to vector<8xf32>
    %113 = vector.shape_cast %112 : vector<8xf32> to vector<8x1xf32>
    %cst_51 = arith.constant 3.200000e+01 : f32
    %114 = vector.broadcast %cst_51 : f32 to vector<8x1xf32>
    %115 = arith.divf %113, %114 : vector<8x1xf32>
    %116 = vector.broadcast %115 : vector<8x1xf32> to vector<8x32xf32>
    %117 = arith.subf %111, %116 : vector<8x32xf32>
    %118 = arith.mulf %117, %117 : vector<8x32xf32>
    %cst_52 = arith.constant dense<0.000000e+00> : vector<8xf32>
    %119 = vector.multi_reduction <add>, %118, %cst_52 [1] : vector<8x32xf32> to vector<8xf32>
    %120 = vector.shape_cast %119 : vector<8xf32> to vector<8x1xf32>
    %cst_53 = arith.constant 3.200000e+01 : f32
    %121 = vector.broadcast %cst_53 : f32 to vector<8x1xf32>
    %122 = arith.divf %120, %121 : vector<8x1xf32>
    %123 = vector.broadcast %115 : vector<8x1xf32> to vector<8x32xf32>
    %124 = arith.subf %111, %123 : vector<8x32xf32>
    %cst_54 = arith.constant 9.99999974E-6 : f32
    %125 = vector.broadcast %cst_54 : f32 to vector<8x1xf32>
    %126 = arith.addf %122, %125 : vector<8x1xf32>
    %127 = math.rsqrt %126 : vector<8x1xf32>
    %128 = vector.broadcast %127 : vector<8x1xf32> to vector<8x32xf32>
    %129 = arith.mulf %124, %128 : vector<8x32xf32>
    %130 = vector.broadcast %24 : vector<1x32xf32> to vector<8x32xf32>
    %131 = arith.mulf %129, %130 : vector<8x32xf32>
    %132 = vector.broadcast %25 : vector<1x32xf32> to vector<8x32xf32>
    %133 = arith.addf %131, %132 : vector<8x32xf32>
    %134 = arith.truncf %133 : vector<8x32xf32> to vector<8x32xbf16>
    %cst_55 = arith.constant dense<0.000000e+00> : vector<8x32xf32>
    %135 = tpu.matmul %134, %20, %cst_55 {dimension_numbers = #tpu.dot_dimension_numbers<[1], [0], [0], [1], [0, 0, 1, 1], [], []>} : vector<8x32xbf16>, vector<32x32xbf16>, vector<8x32xf32> -> vector<8x32xf32>
    %136 = vector.broadcast %21 : vector<1x32xf32> to vector<8x32xf32>
    %137 = arith.addf %135, %136 : vector<8x32xf32>
    %cst_56 = arith.constant 0.000000e+00 : f32
    %138 = vector.broadcast %cst_56 : f32 to vector<8x32xf32>
    %139 = arith.maximumf %137, %138 : vector<8x32xf32>
    %140 = arith.truncf %139 : vector<8x32xf32> to vector<8x32xbf16>
    %cst_57 = arith.constant dense<0.000000e+00> : vector<8x32xf32>
    %141 = tpu.matmul %140, %22, %cst_57 {dimension_numbers = #tpu.dot_dimension_numbers<[1], [0], [0], [1], [0, 0, 1, 1], [], []>} : vector<8x32xbf16>, vector<32x32xbf16>, vector<8x32xf32> -> vector<8x32xf32>
    %142 = vector.broadcast %23 : vector<1x32xf32> to vector<8x32xf32>
    %143 = arith.addf %141, %142 : vector<8x32xf32>
    %144 = arith.addf %133, %143 : vector<8x32xf32>
    %cst_58 = arith.constant dense<0.000000e+00> : vector<8xf32>
    %145 = vector.multi_reduction <add>, %144, %cst_58 [1] : vector<8x32xf32> to vector<8xf32>
    %146 = vector.shape_cast %145 : vector<8xf32> to vector<8x1xf32>
    %cst_59 = arith.constant 3.200000e+01 : f32
    %147 = vector.broadcast %cst_59 : f32 to vector<8x1xf32>
    %148 = arith.divf %146, %147 : vector<8x1xf32>
    %149 = vector.broadcast %148 : vector<8x1xf32> to vector<8x32xf32>
    %150 = arith.subf %144, %149 : vector<8x32xf32>
    %151 = arith.mulf %150, %150 : vector<8x32xf32>
    %cst_60 = arith.constant dense<0.000000e+00> : vector<8xf32>
    %152 = vector.multi_reduction <add>, %151, %cst_60 [1] : vector<8x32xf32> to vector<8xf32>
    %153 = vector.shape_cast %152 : vector<8xf32> to vector<8x1xf32>
    %cst_61 = arith.constant 3.200000e+01 : f32
    %154 = vector.broadcast %cst_61 : f32 to vector<8x1xf32>
    %155 = arith.divf %153, %154 : vector<8x1xf32>
    %156 = vector.broadcast %148 : vector<8x1xf32> to vector<8x32xf32>
    %157 = arith.subf %144, %156 : vector<8x32xf32>
    %cst_62 = arith.constant 9.99999974E-6 : f32
    %158 = vector.broadcast %cst_62 : f32 to vector<8x1xf32>
    %159 = arith.addf %155, %158 : vector<8x1xf32>
    %160 = math.rsqrt %159 : vector<8x1xf32>
    %161 = vector.broadcast %160 : vector<8x1xf32> to vector<8x32xf32>
    %162 = arith.mulf %157, %161 : vector<8x32xf32>
    %163 = vector.broadcast %26 : vector<1x32xf32> to vector<8x32xf32>
    %164 = arith.mulf %162, %163 : vector<8x32xf32>
    %165 = vector.broadcast %27 : vector<1x32xf32> to vector<8x32xf32>
    %166 = arith.addf %164, %165 : vector<8x32xf32>
    %167 = arith.truncf %166 : vector<8x32xf32> to vector<8x32xbf16>
    %c0_63 = arith.constant 0 : index
    %c0_64 = arith.constant 0 : index
    %c0_65 = arith.constant 0 : index
    %168 = vector.load %arg15[%c0_63, %c0_64, %c0_65] : memref<1x8x32xbf16, #tpu.memory_space<vmem>>, vector<1x8x32xbf16>
    %169 = vector.shape_cast %168 : vector<1x8x32xbf16> to vector<8x32xbf16>
    %170 = vector.shape_cast %167 : vector<8x32xbf16> to vector<1x8x32xbf16>
    tpu.vector_store %arg15[%c0_63, %c0_64, %c0_65], %170 {strides = array<i32>} : memref<1x8x32xbf16, #tpu.memory_space<vmem>>, vector<1x8x32xbf16>,
    return
  }
  func.func @transform_0(%arg0: i32) -> (i32, i32, i32) {
    %c0_i32 = arith.constant 0 : i32
    %c0_i32_0 = arith.constant 0 : i32
    %c0_i32_1 = arith.constant 0 : i32
    return %arg0, %c0_i32, %c0_i32_0 : i32, i32, i32
  }
  func.func @transform_1(%arg0: i32) -> (i32, i32) {
    %c0_i32 = arith.constant 0 : i32
    %c0_i32_0 = arith.constant 0 : i32
    %c0_i32_1 = arith.constant 0 : i32
    return %c0_i32, %c0_i32_0 : i32, i32
  }
  func.func @transform_2(%arg0: i32) -> (i32, i32) {
    %c0_i32 = arith.constant 0 : i32
    %c0_i32_0 = arith.constant 0 : i32
    %c0_i32_1 = arith.constant 0 : i32
    return %c0_i32, %c0_i32_0 : i32, i32
  }
  func.func @transform_3(%arg0: i32) -> (i32, i32) {
    %c0_i32 = arith.constant 0 : i32
    %c0_i32_0 = arith.constant 0 : i32
    %c0_i32_1 = arith.constant 0 : i32
    return %c0_i32, %c0_i32_0 : i32, i32
  }
  func.func @transform_4(%arg0: i32) -> (i32, i32) {
    %c0_i32 = arith.constant 0 : i32
    %c0_i32_0 = arith.constant 0 : i32
    %c0_i32_1 = arith.constant 0 : i32
    return %c0_i32, %c0_i32_0 : i32, i32
  }
  func.func @transform_5(%arg0: i32) -> (i32, i32) {
    %c0_i32 = arith.constant 0 : i32
    %c0_i32_0 = arith.constant 0 : i32
    %c0_i32_1 = arith.constant 0 : i32
    return %c0_i32, %c0_i32_0 : i32, i32
  }
  func.func @transform_6(%arg0: i32) -> (i32, i32) {
    %c0_i32 = arith.constant 0 : i32
    %c0_i32_0 = arith.constant 0 : i32
    %c0_i32_1 = arith.constant 0 : i32
    return %c0_i32, %c0_i32_0 : i32, i32
  }
  func.func @transform_7(%arg0: i32) -> (i32, i32) {
    %c0_i32 = arith.constant 0 : i32
    %c0_i32_0 = arith.constant 0 : i32
    %c0_i32_1 = arith.constant 0 : i32
    return %c0_i32, %c0_i32_0 : i32, i32
  }
  func.func @transform_8(%arg0: i32) -> (i32, i32) {
    %c0_i32 = arith.constant 0 : i32
    %c0_i32_0 = arith.constant 0 : i32
    %c0_i32_1 = arith.constant 0 : i32
    return %c0_i32, %c0_i32_0 : i32, i32
  }
  func.func @transform_9(%arg0: i32) -> (i32, i32) {
    %c0_i32 = arith.constant 0 : i32
    %c0_i32_0 = arith.constant 0 : i32
    %c0_i32_1 = arith.constant 0 : i32
    return %c0_i32, %c0_i32_0 : i32, i32
  }
  func.func @transform_10(%arg0: i32) -> (i32, i32) {
    %c0_i32 = arith.constant 0 : i32
    %c0_i32_0 = arith.constant 0 : i32
    %c0_i32_1 = arith.constant 0 : i32
    return %c0_i32, %c0_i32_0 : i32, i32
  }
  func.func @transform_11(%arg0: i32) -> (i32, i32) {
    %c0_i32 = arith.constant 0 : i32
    %c0_i32_0 = arith.constant 0 : i32
    %c0_i32_1 = arith.constant 0 : i32
    return %c0_i32, %c0_i32_0 : i32, i32
  }
  func.func @transform_12(%arg0: i32) -> (i32, i32) {
    %c0_i32 = arith.constant 0 : i32
    %c0_i32_0 = arith.constant 0 : i32
    %c0_i32_1 = arith.constant 0 : i32
    return %c0_i32, %c0_i32_0 : i32, i32
  }
  func.func @transform_13(%arg0: i32) -> (i32, i32) {
    %c0_i32 = arith.constant 0 : i32
    %c0_i32_0 = arith.constant 0 : i32
    %c0_i32_1 = arith.constant 0 : i32
    return %c0_i32, %c0_i32_0 : i32, i32
  }
  func.func @transform_14(%arg0: i32) -> (i32, i32, i32) {
    %c0_i32 = arith.constant 0 : i32
    %c0_i32_0 = arith.constant 0 : i32
    %c0_i32_1 = arith.constant 0 : i32
    return %arg0, %c0_i32, %c0_i32_0 : i32, i32, i32
  }
}

</mosaic_0001>

<bundles_post_ra>
// kernel: tpu_custom_call.1
= control target key start
LH: loop header
LB: loop body
LE: loop exit
PB: predicated region body
PF: predicated region fallthrough
CT: control target
= control target key end

     0   :  { %7 = vsyncpa [#allocation3], 0  ;;  %s649_s0 = inlined_call_operand.hbm [shape: f32[16,128], index: 0, kind: input, shape index: {}]   ;;  %s650_s1 = inlined_call_operand.hbm [shape: f32[8,128], index: 1, kind: input, shape index: {}]   ;;  %s651_s2 = inlined_call_operand.hbm [shape: f32[16,128], index: 2, kind: output, shape index: {}]  }
   0x1   :  { %9 = vsyncpa [#allocation3 + $0x1], 0 }
   0x2   :  { %10 = vsyncpa [#allocation6], 0 }
   0x3   :  { %11 = vsyncpa [#allocation4], 0 }
   0x4   :  { %13 = vsyncpa [#allocation4 + $0x1], 0  ;;  %s483_s9 = smov 0   ;;  %s485_s10 = smov 0  }
   0x5   :  { %s487_s11 = smov 0   ;;  %s489_s12 = smov 0  }
   0x6 LB: > { %s504_s13 = sadd.s32 4294967295, %s463_s12   ;;  %s270_s14 = sadd.s32 4294967294, %s463_s12   ;;  %s463_s12 = sphi %s489_s12, %s674_s12   ;;  %s459_s11 = sphi %s487_s11, %s673_s11   ;;  %s455_s10 = sphi %s485_s10, %s672_s10   ;;  %s451_s9 = sphi %s483_s9, %s671_s9  }
   0x7   : > { %p39_p0 = scmp.ne.s32.totalorder %s455_s10, %s451_s9  ;;  %p652_p1 = scmp.eq.s32.totalorder %s504_s13, 0 }
   0x8   : > { %p90_p3 = scmp.eq.s32.totalorder %s270_s14, 1  ;;  %p271_p5 = scmp.ge.s32.totalorder %s463_s12, 1 }
   0x9   : > { %p513_p4 = por %p652_p1, %p39_p0  ;;  %p97_p7 = scmp.lt.s32.totalorder %s463_s12, 3 }
   0xa   : > { %p518_p6 = por %p90_p3, %p39_p0  ;;  %s465_s18 = smov [#allocation5]  }
   0xb   : > { %s656_s15 = scalar_select %p513_p4, 1, 0 }
   0xc   : > { %s657_s16 = scalar_select %p518_p6, 1, 0 }
   0xd   : > { %p523_p8 = pnand %p271_p5, %p97_p7  ;;  %s110_s19 = sshll.u32 %s465_s18, 4  ;;  %s111_s19 = int_to_ptr.vmem [resolvable:$true] %s110_s19 }
   0xe   : > { %s531_s20 = sadd.s32 1, %s463_s12   ;;  %s26_s24 = sadd.s32 1, %s459_s11 }
   0xf   : > { %s658_s17 = scalar_select %p523_p8, 1, 0 }
  0x10   : > { %p292_p10 = pneg %p523_p8  ;;  %s23_s22 = ssub.s32 %s463_s12, %s531_s20 }
  0x11   : > { %p541_p12 = scmp.eq.s32.totalorder %s23_s22, 0  ;;  %p33_p13 = scmp.ne.s32.totalorder %s459_s11, %s455_s10 }
  0x12   : > { %p535_p11 = pnand %p292_p10, %p652_p1  ;;  %s352_s25 = scalar_lea.vmem %s111_s19, 128 }
  0x13   : > { %p353_p3 = scmp.ne.s32.totalorder %s111_s19, %s352_s25  ;;  %p360_p9 = scmp.lt.s32.totalorder %s111_s19, %s111_s19 }
  0x14   : > { %p343_p0 = pneg %p535_p11  ;;  %p361_p2 = scmp.lt.s32.totalorder %s352_s25, %s352_s25 }
  0x16   : > { %p355_p5 = pnand %p353_p3, %p343_p0  ;;  %p362_p10 = por %p361_p2, %p360_p9 }
  0x18   : > { %p356_p7 = pneg %p355_p5 }
  0x1a   : > { %p363_p1 = pnand %p362_p10, %p356_p7 }
  0x1c   : > { %366 = shalt.err (!%p363_p1)
}
  0x1d   : > { %295 = dma.hbm_to_vmem [thread:$0]  (!%p535_p11), %s650_s1, 128, %s111_s19, [#allocation6]  }
  0x1e   : > { %s558_s28 = scalar_select %p541_p12, %s459_s11, %s26_s24  }
  0x1f   : > { %p34_p1 = scmp.eq.s32.totalorder %s463_s12, 0  ;;  %p661_p2 = scmp.eq.s32.totalorder %s504_s13, 1 }
  0x20   : > { %p305_p0 = scmp.lt.s32.totalorder %s463_s12, 2  ;;  %s121_s30 = sand.u32 1, %s459_s11  }
  0x21   : > { %p566_p9 = por %p661_p2, %p33_p13  ;;  %p35_p3 = por %p34_p1, %p33_p13 }
  0x22   : > { %s274_s3 = sshll.u32 %s121_s30, 3  ;;  %s275_s4 = sshll.u32 %s463_s12, 7 }
  0x23   : > { %s662_s29 = scalar_select %p566_p9, 1, 0 }
  0x24   : > { %s579_s7 = scalar_lea.hbm %s649_s0, %s275_s4  ;;  %s125_s8 = scalar_lea.vmem [#allocation2], %s274_s3 }
  0x25   : > { %s132_s14 = sshll.u32 %s125_s8, 4  ;;  %p581_p11 = pnand %p305_p0, %p35_p3  ;;  %s133_s14 = int_to_ptr.vmem [resolvable:$true] %s132_s14 }
  0x26   : > { %s122_s19 = scalar_lea.sflag [#allocation3], %s121_s30  ;;  %s367_s21 = scalar_lea.hbm %s579_s7, 128 }
  0x27   : > { %p368_p12 = scmp.ne.s32.totalorder %s579_s7, %s367_s21  ;;  %p369_p13 = pneg %p581_p11 }
  0x28   : > { %s372_s24 = scalar_lea.hbm %s649_s0, 256  ;;  %p373_p10 = scmp.lt.s32.totalorder %s579_s7, %s649_s0 }
  0x29   : > { %p370_p5 = pnand %p369_p13, %p368_p12  ;;  %p374_p1 = scmp.lt.s32.totalorder %s372_s24, %s367_s21 }
  0x2b   : > { %p371_p7 = pneg %p370_p5  ;;  %p375_p2 = por %p374_p1, %p373_p10 }
  0x2d   : > { %p376_p0 = pnand %p375_p2, %p371_p7 }
  0x2f   : > { %379 = shalt.err (!%p376_p0)
}
  0x30   : > { %s380_s27 = scalar_lea.vmem %s133_s14, 128  ;;  %s466_s30 = smov [#allocation2]  }
  0x31   : > { %p381_p3 = scmp.ne.s32.totalorder %s133_s14, %s380_s27  ;;  %s385_s3 = sshll.u32 %s466_s30, 4  ;;  %s386_s3 = int_to_ptr.vmem [resolvable:$false] %s385_s3 }
  0x32   : > { %s387_s4 = scalar_lea.vmem %s386_s3, 256  ;;  %p388_p12 = scmp.lt.s32.totalorder %s133_s14, %s386_s3 }
  0x33   : > { %p383_p6 = pnand %p381_p3, %p369_p13  ;;  %p389_p5 = scmp.lt.s32.totalorder %s387_s4, %s380_s27 }
  0x35   : > { %p384_p9 = pneg %p383_p6  ;;  %p390_p4 = por %p389_p5, %p388_p12 }
  0x37   : > { %p391_p8 = pnand %p390_p4, %p384_p9 }
  0x39   : > { %394 = shalt.err (!%p391_p8)
}
  0x3a   : > { %299 = dma.hbm_to_vmem [thread:$0]  (!%p581_p11), %s579_s7, 128, %s133_s14, %s122_s19  }
  0x3b   : > { %p664_p7 = scmp.ne.s32.totalorder %s658_s17, 0 }
  0x3c   : > { %s602_s5 = sand.u32 (!%p664_p7), 1, %s455_s10   ;;  %p665_p6 = scmp.ne.s32.totalorder (!%p664_p7), %s656_s15, 0 }
  0x3d   : > { %141 = sbr.rel (%p664_p7) target bundleno = 95 (0x5f), region = 28  ;;  %s277_s6 = sshll.u32 (!%p664_p7), %s602_s5, 3 }
  0x3e   : > { %s144_s8 = scalar_lea.sflag (!%p664_p7), [#allocation3], %s602_s5  ;;  %s147_s21 = scalar_lea.vmem (!%p664_p7), [#allocation2], %s277_s6 }
  0x42   : > { %438 = dma.done.wait (%p665_p6), %s144_s8, 128  }
  0x43   : > { %440 = vsyncadd (%p665_p6), %s144_s8, 4294967168  ;;  %p666_p4 = scmp.eq.s32.totalorder %s504_s13, 0 }
  0x45   : > { %442 = dma.done.wait (%p666_p4), [#allocation6], 128   ;;  %p667_p8 = pmov %p666_p4 }
  0x46   : > { %s171_s17 = scalar_lea.vmem [#allocation7], %s277_s6  ;;  %s281_s14 = sshll.u32 %s504_s13, 7  ;;  %v172_v0 = vld [vmem:[%s147_s21] sm:$0xff]  ;;  %v173_v1 = vld [vmem:[#allocation5] sm:$0xff] }
  0x47   : > { %444 = vsyncadd (%p667_p8), [#allocation6], 4294967168  ;;  %s190_s7 = sshll.u32 %s171_s17, 4  ;;  %v174_v2 = vadd.f32 %v173_v1, %v172_v0  ;;  %s188_s15 = scalar_lea.hbm %s651_s2, %s281_s14  ;;  %s191_s7 = int_to_ptr.vmem [resolvable:$true] %s190_s7 }
  0x48   : > { %s177_s22 = scalar_lea.sflag [#allocation4], %s602_s5  ;;  %s395_s23 = scalar_lea.vmem %s191_s7, 128 }
  0x49   : > { %175 = vst [vmem:[%s171_s17] sm:$0xff] %v174_v2  ;;  %p396_p9 = scmp.ne.s32.totalorder %s191_s7, %s395_s23  ;;  %p668_p11 = scmp.ne.s32.totalorder %s662_s29, 0 }
  0x4a   : > { %s467_s24 = smov [#allocation7]  }
  0x4b   : > { %p397_p13 = pnand %p396_p9, %p668_p11  ;;  %s399_s25 = sshll.u32 %s467_s24, 4  ;;  %s400_s25 = int_to_ptr.vmem [resolvable:$false] %s399_s25 }
  0x4c   : > { %s401_s26 = scalar_lea.vmem %s400_s25, 256  ;;  %p402_p1 = scmp.lt.s32.totalorder %s191_s7, %s400_s25 }
  0x4d   : > { %p398_p10 = pneg %p397_p13  ;;  %p403_p2 = scmp.lt.s32.totalorder %s401_s26, %s395_s23 }
  0x4f   : > { %p404_p0 = por %p403_p2, %p402_p1 }
  0x51   : > { %p405_p3 = pnand %p404_p0, %p398_p10 }
  0x53   : > { %408 = shalt.err (!%p405_p3)
}
  0x54   : > { %s409_s13 = scalar_lea.hbm %s188_s15, 128  ;;  %s413_s3 = scalar_lea.hbm %s651_s2, 256 }
  0x55   : > { %p410_p12 = scmp.ne.s32.totalorder %s188_s15, %s409_s13  ;;  %p414_p6 = scmp.lt.s32.totalorder %s188_s15, %s651_s2 }
  0x56   : > { %p415_p4 = scmp.lt.s32.totalorder %s413_s3, %s409_s13 }
  0x57   : > { %p411_p5 = pnand %p410_p12, %p668_p11 }
  0x58   : > { %p416_p8 = por %p415_p4, %p414_p6 }
  0x59   : > { %p412_p7 = pneg %p411_p5 }
  0x5b   : > { %p417_p9 = pnand %p416_p8, %p412_p7 }
  0x5d   : > { %420 = shalt.err (!%p417_p9)
}
  0x5e   : > { %290 = dma.vmem_to_hbm [thread:$0]  (%p668_p11), %s191_s7, 128, %s188_s15, %s177_s22  }
  0x5f PF: > { %s202_s6 = sand.u32 1, %s451_s9   ;;  %p669_p13 = scmp.ne.s32.totalorder %s657_s16, 0 }
  0x60   : > { %p670_p10 = scmp.ge.s32.totalorder %s463_s12, 2  ;;  %s203_s8 = scalar_lea.sflag [#allocation4], %s202_s6 }
  0x62   : > { %p301_p1 = pnand %p670_p10, %p669_p13 }
  0x64   : > { %p302_p2 = pneg %p301_p1 }
  0x66   : > { %446 = dma.done.wait (%p302_p2), %s203_s8, 128  }
  0x67   : > { %448 = vsyncadd (%p302_p2), %s203_s8, 4294967168  ;;  %p16_p0 = scmp.ge.s32.totalorder %s531_s20, 4   ;;  %s671_s9 = smov %s455_s10 }
  0x68   : > { %s672_s10 = smov %s459_s11  ;;  %s673_s11 = smov %s558_s28 }
  0x69   : > { %s674_s12 = smov %s531_s20  ;;  %18 = sbr.rel (!%p16_p0) target bundleno = 6 (0x6), region = 77 }
  0x6e   :  { %208 = vsyncpa [#allocation3], 1 }
  0x6f   :  { %210 = vsyncpa [#allocation3 + $0x1], 1 }
  0x70   :  { %211 = vsyncpa [#allocation6], 1 }
  0x71   :  { %212 = vsyncpa [#allocation4], 1 }
  0x72   :  { %214 = vsyncpa [#allocation4 + $0x1], 1 }

// kernel: transformer_forward.3
= control target key start
LH: loop header
LB: loop body
LE: loop exit
PB: predicated region body
PF: predicated region fallthrough
CT: control target
= control target key end

     0   :  { %s2242_s0 = inlined_call_operand.vmem [shape: bf16[2,8,32], index: 0, kind: input, shape index: {}]   ;;  %s2243_s1 = inlined_call_operand.vmem [shape: bf16[32,96], index: 1, kind: input, shape index: {}]   ;;  %s2244_s2 = inlined_call_operand.vmem [shape: f32[1,96], index: 2, kind: input, shape index: {}]   ;;  %s2245_s3 = inlined_call_operand.vmem [shape: bf16[32,32], index: 3, kind: input, shape index: {}]   ;;  %s2246_s4 = inlined_call_operand.vmem [shape: f32[1,32], index: 4, kind: input, shape index: {}]   ;;  %s2247_s5 = inlined_call_operand.vmem [shape: bf16[32,32], index: 5, kind: input, shape index: {}]   ;;  %s2248_s6 = inlined_call_operand.vmem [shape: f32[1,32], index: 6, kind: input, shape index: {}]   ;;  %s2249_s7 = inlined_call_operand.vmem [shape: bf16[32,32], index: 7, kind: input, shape index: {}]   ;;  %s2250_s8 = inlined_call_operand.vmem [shape: f32[1,32], index: 8, kind: input, shape index: {}]   ;;  %s2251_s9 = inlined_call_operand.vmem [shape: f32[1,32], index: 9, kind: input, shape index: {}]   ;;  %s2252_s10 = inlined_call_operand.vmem [shape: f32[1,32], index: 10, kind: input, shape index: {}]   ;;  %s2253_s11 = inlined_call_operand.vmem [shape: f32[1,32], index: 11, kind: input, shape index: {}]   ;;  %s2254_s12 = inlined_call_operand.vmem [shape: f32[1,32], index: 12, kind: input, shape index: {}]   ;;  %s2255_s13 = inlined_call_operand.vmem [shape: f32[1,32], index: 13, kind: input, shape index: {}]   ;;  %s2256_s14 = inlined_call_operand.<no memory space> [shape: f32[1,1], index: 14, kind: input, shape index: {}]   ;;  %s2257_s15 = inlined_call_operand.hbm [shape: f32[2,1,8], index: 15, kind: output, shape index: {}]  }
   0x1   :  { %2258 = sst [smem:[#allocation6_spill]] %s2242_s0  ;;  %v20_v0 = vstv %s2256_s14 }
   0x2   :  { %2259 = sst [smem:[#allocation7_spill]] %s2243_s1  ;;  %21 = vst [vmem:[#allocation2] sm:$0x1] %v20_v0 }
   0x3   :  { %2260 = sst [smem:[#allocation8_spill]] %s2244_s2 }
   0x4   :  { %2261 = sst [smem:[#allocation9_spill]] %s2245_s3 }
   0x5   :  { %22 = vsyncpa [#allocation4], 0 }
   0x6   :  { %24 = vsyncpa [#allocation4 + $0x1], 0  ;;  %s1977_s20 = smov 0   ;;  %s1979_s21 = smov 0  }
   0x7   :  { %s1981_s22 = smov 0   ;;  %s1983_s23 = smov 0  }
   0x8 LB: > { %s1998_s14 = sadd.s32 4294967295, %s1877_s23   ;;  %s1561_s24 = sadd.s32 4294967294, %s1877_s23   ;;  %s1877_s23 = sphi %s1983_s23, %s2271_s23   ;;  %s1873_s22 = sphi %s1981_s22, %s2270_s22   ;;  %s1869_s21 = sphi %s1979_s21, %s2269_s21   ;;  %s1865_s20 = sphi %s1977_s20, %s2268_s20  }
   0x9   : > { %s2002_s25 = sadd.s32 1, %s1877_s23   ;;  %s357_s26 = sadd.s32 1, %s1873_s22 }
   0xa   : > { %s354_s27 = ssub.s32 %s1877_s23, %s2002_s25  ;;  %p367_p0 = scmp.ne.s32.totalorder %s1873_s22, %s1869_s21 }
   0xb   : > { %p355_p1 = scmp.eq.s32.totalorder %s354_s27, 0  ;;  %p368_p2 = scmp.eq.s32.totalorder %s1998_s14, 1 }
   0xc   : > { %p373_p3 = scmp.ne.s32.totalorder %s1869_s21, %s1865_s20  ;;  %p374_p4 = scmp.eq.s32.totalorder %s1561_s24, 1 }
   0xd   : > { %s2013_s28 = scalar_select %p355_p1, %s1873_s22, %s357_s26  }
   0xe   : > { %p2015_p5 = por %p368_p2, %p367_p0  ;;  %p2019_p6 = por %p374_p4, %p373_p3 }
   0xf   : > { %p1564_p7 = scmp.ge.s32.totalorder %s1877_s23, 1  ;;  %p441_p8 = scmp.lt.s32.totalorder %s1877_s23, 3 }
  0x11   : > { %p442_p9 = pnand %p1564_p7, %p441_p8 }
  0x12   : > { %s2264_s1 = sld [smem:[#allocation7_spill]] (!%p442_p9)  ;;  %p487_p10 = scmp.lt.s32.totalorder (!%p442_p9), %s1998_s14, 1 }
  0x13   : > { %445 = sbr.rel (%p442_p9) target bundleno = 3712 (0xe80), region = 80  ;;  %s2265_s0 = sld [smem:[#allocation6_spill]] (!%p442_p9) }
  0x14   : > { %s2266_s2 = sld [smem:[#allocation8_spill]] (!%p442_p9)  ;;  %s1883_s27 = smov (!%p442_p9), 88  }
  0x15   : > { %s1884_s16 = smov (!%p442_p9), 64   ;;  %s1886_s18 = smov (!%p442_p9), 112  }
  0x16   : > { %s1887_s19 = smov (!%p442_p9), 80   ;;  %s2267_s3 = sld [smem:[#allocation9_spill]] (!%p442_p9) }
  0x18   : > { %v1791_v1 = vld [vmem:[%s2264_s1 + $0x8] sm:$0xff]   ;;  %v1879_v2 = vmov 0.0   ;;  %v1792_v3 = vld [vmem:[%s2264_s1] sm:$0xff]   ;;  %vm1880_vm0 = vmmov 0   ;;  %s488_s24 = scalar_select %p487_p10, %s1998_s14, 1  ;;  %vm517_vm1 = vcmask 261120  }
  0x19   : > { %1635 = vmatprep.subr.bf16.mxu0 %v1879_v2  ;;  %1643 = vmatprep.subr.bf16.mxu1 %v1879_v2  ;;  %vm588_vm2 = vcmask 64512   ;;  %vm652_vm3 = vcmask 1043456   ;;  %vm1491_vm4 = vcmask 57344  }
  0x1a   : > { %1636 = vmatpush3.bf16.msra.mxu0 %v1791_v1  ;;  %1639 = vmatprep.mubr.msk.bf16.mxu0 %vm1880_vm0, %v1879_v2  ;;  %s1565_s26 = sshll.u32 %s488_s24, 2  ;;  %v1566_v5 = vld [vmem:[%s2266_s2] ss:$0 sm:$0xff]  ;;  %s1881_s24 = smov 96  }
  0x1b   : > { %1637 = vmatprep.subr.bf16.mxu0 %v1879_v2  ;;  %1645 = vmatprep.mubr.msk.bf16.mxu1 %vm1880_vm0, %v1879_v2  ;;  %s490_s17 = scalar_lea.vmem %s2265_s0, %s1565_s26  ;;  %s1882_s26 = smov 120  }
  0x1c   : > { %v2044_v4 = vld [vmem:[%s490_s17] sm:$0xf]  ;;  %s1885_s17 = smov 56   ;;  %v565_v53 = vld [vmem:[%s2267_s3 + $0x4] sm:$0xf] }
  0x1d   : > { %v564_v51 = vld [vmem:[%s2267_s3] sm:$0xf]  ;;  %v813_v54 = vsel %vm652_vm3, %v565_v53, 0 }
  0x1e   : > { %1638 = vmatpush3.bf16.msra.mxu0 %v1792_v3  ;;  %v859_v52 = vsel %vm652_vm3, %v564_v51, 0 }
  0x1f   : > { %1649 = vmatprep.subr.bf16.mxu0 %v1879_v2 }
  0x21   : > { %1640 = vmatmul.mubr.msk.bf16.vlgmr.msra.gmra.mxu0 %vm517_vm1, %v2044_v4 }
  0x22   : > { %1651 = vmatprep.mubr.msk.bf16.mxu0 %vm1880_vm0, %v1879_v2 }
  0xe1   : > { %v555_v6 = vpop.f32.mrf.mxu0 }
  0xe2   : > { %v556_v7 = vadd.f32 %v1566_v5, %v555_v6 }
  0xe3   : > { %v1641_v8 = vpop.f32.mrf.mxu0 }
  0xe4   : > { %v561_v9 = vmul.f32 0.35355338, %v556_v7  ;;  %v2053_v10 = vpack.c.bf16 %v556_v7, %v556_v7 }
  0xe5   : > { %v558_v11 = vpop.f32.mrf.mxu0 }
  0xe6   : > { %v2055_v12 = vpack.c.bf16 %v561_v9, %v561_v9  ;;  %586 = vrot.lane.b32.xlu0 %v2053_v10, %s1881_s24 }
  0xe7   : > { %v1642_v13 = vpop.f32.mrf.mxu0 }
  0xe8   : > { %698 = vrot.lane.b32.xlu1 %v2055_v12, %s1882_s26  ;;  %s485_s26 = sand.u32 1, %s1869_s21  }
  0xe9   : > { %s1494_s24 = scalar_lea.sflag [#allocation4], %s485_s26 }
  0xea   : > { %700 = vrot.lane.b32.xlu0 %v2053_v10, %s1883_s27  ;;  %s1891_s27 = smov 40  }
 0x158   : > { %v587_v14 = vpop.permute.xlu0 %586 }
 0x159   : > { %v593_v15 = vsel %vm588_vm2, %v587_v14, 0 }
 0x15a   : > { %1644 = vmatpush3.bf16.xpose.msra.mxu1 %v593_v15  ;;  %v699_v18 = vpop.permute.xlu1 %698 }
 0x15b   : > { %1655 = vmatprep.subr.bf16.mxu1 %v1879_v2 }
 0x15c   : > { %v701_v16 = vpop.permute.xlu0 %700 }
 0x15d   : > { %v706_v17 = vsel %vm588_vm2, %v701_v16, 0 }
 0x161   : > { %1646 = vmatmul.mubr.msk.bf16.vlgmr.msra.gmra.mxu1 %vm588_vm2, %v2055_v12 }
 0x162   : > { %1656 = vmatpush3.bf16.xpose.msra.mxu1 %v706_v17  ;;  %1657 = vmatprep.mubr.msk.bf16.mxu1 %vm1880_vm0, %v1879_v2 }
 0x163   : > { %1667 = vmatprep.subr.bf16.mxu1 %v1879_v2 }
 0x169   : > { %1658 = vmatmul.mubr.msk.bf16.vlgmr.msra.gmra.mxu1 %vm588_vm2, %v699_v18 }
 0x16a   : > { %1669 = vmatprep.mubr.msk.bf16.mxu1 %vm1880_vm0, %v1879_v2  ;;  %1668 = vmatpush3.bf16.msra.mxu1 %v813_v54 }
 0x16b   : > { %1679 = vmatprep.subr.bf16.mxu1 %v1879_v2 }
 0x221   : > { %v629_v19 = vpop.f32.mrf.mxu1 }
 0x222   : > { %v635_v20 = vsel %vm588_vm2, %v629_v19, -inf }
 0x223   : > { %636 = vmax.xlane.f32.xlu1 %v635_v20  ;;  %v1647_v21 = vpop.f32.mrf.mxu1 }
 0x225   : > { %v632_v22 = vpop.f32.mrf.mxu1 }
 0x227   : > { %v1648_v23 = vpop.f32.mrf.mxu1 }
 0x229   : > { %v742_v24 = vpop.f32.mrf.mxu1 }
 0x22a   : > { %v748_v25 = vsel %vm588_vm2, %v742_v24, -inf }
 0x22b   : > { %749 = vmax.xlane.f32.xlu0 %v748_v25  ;;  %v1659_v26 = vpop.f32.mrf.mxu1 }
 0x22d   : > { %v745_v27 = vpop.f32.mrf.mxu1 }
 0x22f   : > { %v1660_v28 = vpop.f32.mrf.mxu1 }
 0x2ac   : > { %v637_v29 = vpop.xlane.xlu1 %636 }
 0x2ad   : > { %v638_v30 = vsub.f32 %v629_v19, %v637_v29 }
 0x2af   : > { %v639_v31 = vmul.f32 1.442695, %v638_v30 }
 0x2b1   : > { %1797 = vpow2.f32 %v639_v31 }
 0x2b4   : > { %v750_v32 = vpop.xlane.xlu0 %749 }
 0x2b5   : > { %v751_v33 = vsub.f32 %v742_v24, %v750_v32 }
 0x2b7   : > { %v752_v34 = vmul.f32 1.442695, %v751_v33 }
 0x2b9   : > { %1799 = vpow2.f32 %v752_v34 }
 0x2be   : > { %v1798_v35 = vpop.eup %1797 }
 0x2bf   : > { %v641_v36 = vsel %vm588_vm2, %v1798_v35, 0.0 }
 0x2c0   : > { %642 = vadd.xlane.f32.xlu0 %v641_v36 }
 0x2c6   : > { %v1800_v37 = vpop.eup %1799 }
 0x2c7   : > { %v754_v38 = vsel %vm588_vm2, %v1800_v37, 0.0 }
 0x2c8   : > { %755 = vadd.xlane.f32.xlu1 %v754_v38 }
 0x2d6   : > { %647 = vrot.lane.b32.xlu0 %v2053_v10, %s1884_s16  ;;  %s486_s16 = scalar_lea.vmem [#allocation3], %s485_s26 }
 0x2d9   : > { %760 = vrot.lane.b32.xlu1 %v2053_v10, %s1885_s17  ;;  %s1888_s17 = smov 72  }
 0x2da   : > { %901 = vrot.lane.b32.xlu0 %v2055_v12, %s1886_s18  ;;  %s1889_s18 = smov 104  }
 0x2dd   : > { %903 = vrot.lane.b32.xlu1 %v2053_v10, %s1887_s19  ;;  %s1890_s19 = smov 48  }
 0x349   : > { %v643_v39 = vpop.xlane.xlu0 %642 }
 0x34a   : > { %1801 = vrcp.f32 %v643_v39 }
 0x34d   : > { %v648_v40 = vpop.permute.xlu0 %647 }
 0x34e   : > { %v654_v41 = vsel %vm652_vm3, %v648_v40, 0 }
 0x34f   : > { %1650 = vmatpush3.bf16.msra.mxu0 %v654_v41 }
 0x350   : > { %1661 = vmatprep.subr.bf16.mxu0 %v1879_v2 }
 0x351   : > { %v756_v42 = vpop.xlane.xlu1 %755  ;;  %v902_v5 = vpop.permute.xlu0 %901 }
 0x352   : > { %1803 = vrcp.f32 %v756_v42 }
 0x355   : > { %v761_v45 = vpop.permute.xlu1 %760 }
 0x356   : > { %v766_v47 = vsel %vm652_vm3, %v761_v45, 0 }
 0x357   : > { %v1802_v43 = vpop.eup %1801 }
 0x358   : > { %v645_v44 = vmul.f32 %v1802_v43, %v1798_v35  ;;  %v566_v35 = vld [vmem:[%s2267_s3 + $0x8] sm:$0xf] }
 0x359   : > { %v904_v60 = vpop.permute.xlu1 %903  ;;  %v1016_v36 = vsel %vm652_vm3, %v566_v35, 0  ;;  %v1796_v35 = vld [vmem:[%s2249_s7] sm:$0xff]  }
 0x35a   : > { %v646_v46 = vpack.c.bf16 %v645_v44, %v645_v44  ;;  %v909_v0 = vsel %vm588_vm2, %v904_v60, 0 }
 0x35c   : > { %1652 = vmatmul.mubr.msk.bf16.vlgmr.msra.gmra.mxu0 %vm588_vm2, %v646_v46 }
 0x35d   : > { %1662 = vmatpush3.bf16.msra.mxu0 %v766_v47  ;;  %1663 = vmatprep.mubr.msk.bf16.mxu0 %vm1880_vm0, %v1879_v2 }
 0x35e   : > { %1673 = vmatprep.subr.bf16.mxu0 %v1879_v2 }
 0x35f   : > { %v1804_v48 = vpop.eup %1803 }
 0x360   : > { %v758_v49 = vmul.f32 %v1804_v48, %v1800_v37 }
 0x362   : > { %v759_v50 = vpack.c.bf16 %v758_v49, %v758_v49 }
 0x364   : > { %1664 = vmatmul.mubr.msk.bf16.vlgmr.msra.gmra.mxu0 %vm588_vm2, %v759_v50 }
 0x365   : > { %1675 = vmatprep.mubr.msk.bf16.mxu0 %vm1880_vm0, %v1879_v2  ;;  %1674 = vmatpush3.bf16.msra.mxu0 %v859_v52 }
 0x366   : > { %1685 = vmatprep.subr.bf16.mxu0 %v1879_v2 }
 0x41c   : > { %v690_v55 = vpop.f32.mrf.mxu0 }
 0x41d   : > { %v696_v56 = vpack.c.bf16 %v690_v55, %v690_v55 }
 0x41e   : > { %v1653_v57 = vpop.f32.mrf.mxu0 }
 0x41f   : > { %1676 = vmatmul.mubr.msk.bf16.vlgmr.msra.gmra.mxu0 %vm588_vm2, %v696_v56 }
 0x420   : > { %v693_v58 = vpop.f32.mrf.mxu0  ;;  %1687 = vmatprep.mubr.msk.bf16.mxu0 %vm1880_vm0, %v1879_v2 }
 0x422   : > { %v1654_v59 = vpop.f32.mrf.mxu0 }
 0x424   : > { %v802_v61 = vpop.f32.mrf.mxu0 }
 0x425   : > { %v808_v62 = vpack.c.bf16 %v802_v61, %v802_v61 }
 0x426   : > { %v1665_v63 = vpop.f32.mrf.mxu0 }
 0x427   : > { %1670 = vmatmul.mubr.msk.bf16.vlgmr.msra.gmra.mxu1 %vm588_vm2, %v808_v62  ;;  %v567_v62 = vld [vmem:[%s2267_s3 + $0xc] sm:$0xf] }
 0x428   : > { %1680 = vmatpush3.bf16.xpose.msra.mxu1 %v909_v0  ;;  %v805_v1 = vpop.f32.mrf.mxu0  ;;  %1681 = vmatprep.mubr.msk.bf16.mxu1 %vm1880_vm0, %v1879_v2  ;;  %v1174_v63 = vsel %vm652_vm3, %v567_v62, 0 }
 0x429   : > { %1691 = vmatprep.subr.bf16.mxu1 %v1879_v2 }
 0x42a   : > { %v1666_v3 = vpop.f32.mrf.mxu0 }
 0x42f   : > { %1682 = vmatmul.mubr.msk.bf16.vlgmr.msra.gmra.mxu1 %vm588_vm2, %v902_v5 }
 0x430   : > { %1693 = vmatprep.mubr.msk.bf16.mxu1 %vm1880_vm0, %v1879_v2  ;;  %1692 = vmatpush3.bf16.msra.mxu1 %v1016_v36  ;;  %v1585_v36 = vld [vmem:[%s2248_s6] ss:$0 sm:$0xff] }
 0x431   : > { %1703 = vmatprep.subr.bf16.mxu1 %v1879_v2 }
 0x4df   : > { %v895_v6 = vpop.f32.mrf.mxu0 }
 0x4e1   : > { %v1677_v7 = vpop.f32.mrf.mxu0 }
 0x4e2   : > { %v1582_v7 = vld [vmem:[%s2246_s4] ss:$0 sm:$0xff] }
 0x4e3   : > { %v898_v8 = vpop.f32.mrf.mxu0 }
 0x4e5   : > { %v1678_v9 = vpop.f32.mrf.mxu0 }
 0x4e7   : > { %v849_v11 = vpop.f32.mrf.mxu1 }
 0x4e8   : > { %v2110_v13 = vadd.f32 %v895_v6, %v849_v11  ;;  %v493_v11 = vunpack.c.l.bf16 %v2044_v4  ;;  %v1794_v4 = vld [vmem:[%s2247_s5] sm:$0xff]  }
 0x4e9   : > { %v1671_v14 = vpop.f32.mrf.mxu1 }
 0x4eb   : > { %v852_v15 = vpop.f32.mrf.mxu1 }
 0x4ed   : > { %v1672_v16 = vpop.f32.mrf.mxu1 }
 0x4ef   : > { %v945_v17 = vpop.f32.mrf.mxu1 }
 0x4f0   : > { %v951_v18 = vsel %vm588_vm2, %v945_v17, -inf }
 0x4f1   : > { %952 = vmax.xlane.f32.xlu1 %v951_v18  ;;  %v1683_v19 = vpop.f32.mrf.mxu1 }
 0x4f3   : > { %v948_v20 = vpop.f32.mrf.mxu1 }
 0x4f5   : > { %v1684_v21 = vpop.f32.mrf.mxu1 }
 0x502   : > { %1061 = vrot.lane.b32.xlu1 %v2053_v10, %s1888_s17  ;;  %s1506_s17 = sshll.u32 %s486_s16, 4  ;;  %s1507_s17 = int_to_ptr.vmem [resolvable:$true] %s1506_s17 }
 0x503   : > { %s1817_s1 = scalar_lea.vmem %s1507_s17, 16 }
 0x504   : > { %p1818_p11 = scmp.ne.s32.totalorder %s1507_s17, %s1817_s1 }
 0x506   : > { %1059 = vrot.lane.b32.xlu1 %v2055_v12, %s1889_s18  ;;  %p1819_p12 = pnand %p1818_p11, %p2015_p5 }
 0x508   : > { %p1820_p13 = pneg %p1819_p12 }
 0x57a   : > { %v953_v22 = vpop.xlane.xlu1 %952 }
 0x57b   : > { %v954_v23 = vsub.f32 %v945_v17, %v953_v22 }
 0x57d   : > { %v955_v24 = vmul.f32 1.442695, %v954_v23 }
 0x57e   : > { %v1062_v31 = vpop.permute.xlu1 %1061 }
 0x57f   : > { %1805 = vpow2.f32 %v955_v24  ;;  %v1067_v33 = vsel %vm588_vm2, %v1062_v31, 0  ;;  %v1793_v24 = vld [vmem:[%s2247_s5 + $0x8] sm:$0xff]  }
 0x582   : > { %v1060_v34 = vpop.permute.xlu1 %1059 }
 0x58c   : > { %v1806_v25 = vpop.eup %1805 }
 0x58d   : > { %v957_v26 = vsel %vm588_vm2, %v1806_v25, 0.0 }
 0x58e   : > { %958 = vadd.xlane.f32.xlu0 %v957_v26 }
 0x5a4   : > { %963 = vrot.lane.b32.xlu0 %v2053_v10, %s1890_s19 }
 0x617   : > { %v959_v27 = vpop.xlane.xlu0 %958 }
 0x618   : > { %1807 = vrcp.f32 %v959_v27 }
 0x61b   : > { %v964_v28 = vpop.permute.xlu0 %963 }
 0x61c   : > { %v969_v29 = vsel %vm652_vm3, %v964_v28, 0 }
 0x61d   : > { %1686 = vmatpush3.bf16.msra.mxu0 %v969_v29  ;;  %v1583_v29 = vld [vmem:[%s2251_s9] ss:$0 sm:$0xff] }
 0x61e   : > { %1697 = vmatprep.subr.bf16.mxu0 %v1879_v2 }
 0x625   : > { %v1808_v12 = vpop.eup %1807 }
 0x626   : > { %v961_v30 = vmul.f32 %v1808_v12, %v1806_v25 }
 0x628   : > { %v962_v32 = vpack.c.bf16 %v961_v30, %v961_v30  ;;  %v1584_v30 = vld [vmem:[%s2252_s10] ss:$0 sm:$0xff] }
 0x62a   : > { %1688 = vmatmul.mubr.msk.bf16.vlgmr.msra.gmra.mxu0 %vm588_vm2, %v962_v32 }
 0x62b   : > { %1698 = vmatpush3.bf16.xpose.msra.mxu0 %v1067_v33  ;;  %1699 = vmatprep.mubr.msk.bf16.mxu0 %vm1880_vm0, %v1879_v2 }
 0x62c   : > { %1709 = vmatprep.subr.bf16.mxu0 %v1879_v2 }
 0x632   : > { %1700 = vmatmul.mubr.msk.bf16.vlgmr.msra.gmra.mxu0 %vm588_vm2, %v1060_v34  ;;  %v1795_v34 = vld [vmem:[%s2249_s7 + $0x8] sm:$0xff]  }
 0x633   : > { %1711 = vmatprep.mubr.msk.bf16.mxu0 %vm1880_vm0, %v1879_v2  ;;  %1710 = vmatpush3.bf16.msra.mxu0 %v1174_v63  ;;  %v1594_v63 = vld [vmem:[%s2254_s12] ss:$0 sm:$0xff] }
 0x634   : > { %1723 = vmatprep.subr.bf16.mxu0 %v1879_v2 }
 0x6ea   : > { %v1005_v37 = vpop.f32.mrf.mxu0 }
 0x6eb   : > { %v1011_v38 = vpack.c.bf16 %v1005_v37, %v1005_v37 }
 0x6ec   : > { %v1689_v39 = vpop.f32.mrf.mxu0 }
 0x6ed   : > { %1694 = vmatmul.mubr.msk.bf16.vlgmr.msra.gmra.mxu1 %vm588_vm2, %v1011_v38 }
 0x6ee   : > { %v1008_v40 = vpop.f32.mrf.mxu0  ;;  %1705 = vmatprep.mubr.msk.bf16.mxu1 %vm1880_vm0, %v1879_v2 }
 0x6f0   : > { %v1690_v41 = vpop.f32.mrf.mxu0 }
 0x6f2   : > { %v1103_v42 = vpop.f32.mrf.mxu0 }
 0x6f3   : > { %v1109_v43 = vsel %vm588_vm2, %v1103_v42, -inf }
 0x6f4   : > { %1110 = vmax.xlane.f32.xlu0 %v1109_v43  ;;  %v1701_v44 = vpop.f32.mrf.mxu0 }
 0x6f6   : > { %v1106_v45 = vpop.f32.mrf.mxu0 }
 0x6f8   : > { %v1702_v46 = vpop.f32.mrf.mxu0 }
 0x70a   : > { %1121 = vrot.lane.b32.xlu0 %v2053_v10, %s1891_s27  ;;  %s1597_s27 = sshll.u32 %s1998_s14, 4  ;;  %s1893_s14 = smov [#allocation3]  }
 0x70b   : > { %s2207_s19 = scalar_lea.hbm %s2257_s15, %s1597_s27  ;;  %s1821_s2 = sshll.u32 %s1893_s14, 4  ;;  %s1822_s2 = int_to_ptr.vmem [resolvable:$false] %s1821_s2 }
 0x70c   : > { %s1823_s3 = scalar_lea.vmem %s1822_s2, 32  ;;  %p1824_p0 = scmp.lt.s32.totalorder %s1507_s17, %s1822_s2 }
 0x70d   : > { %p1825_p1 = scmp.lt.s32.totalorder %s1823_s3, %s1817_s1 }
 0x70f   : > { %p1826_p2 = por %p1825_p1, %p1824_p0 }
 0x711   : > { %p1827_p3 = pnand %p1826_p2, %p1820_p13 }
 0x77d   : > { %v1111_v47 = vpop.xlane.xlu0 %1110 }
 0x77e   : > { %v1112_v48 = vsub.f32 %v1103_v42, %v1111_v47 }
 0x780   : > { %v1113_v49 = vmul.f32 1.442695, %v1112_v48 }
 0x781   : > { %v1122_v50 = vpop.permute.xlu0 %1121 }
 0x782   : > { %1809 = vpow2.f32 %v1113_v49  ;;  %v1127_v51 = vsel %vm652_vm3, %v1122_v50, 0 }
 0x783   : > { %1704 = vmatpush3.bf16.msra.mxu1 %v1127_v51 }
 0x784   : > { %1715 = vmatprep.subr.bf16.mxu1 %v1879_v2 }
 0x78f   : > { %v1810_v52 = vpop.eup %1809 }
 0x790   : > { %v1115_v53 = vsel %vm588_vm2, %v1810_v52, 0.0 }
 0x791   : > { %1116 = vadd.xlane.f32.xlu1 %v1115_v53 }
 0x7ad   : > { %v1052_v54 = vpop.f32.mrf.mxu1 }
 0x7ae   : > { %v1058_v55 = vadd.f32 %v1052_v54, %v2110_v13 }
 0x7af   : > { %v1695_v56 = vpop.f32.mrf.mxu1 }
 0x7b0   : > { %v584_v56 = vld [vmem:[#allocation2] sm:$0x1] }
 0x7b1   : > { %v1055_v57 = vpop.f32.mrf.mxu1 }
 0x7b2   : > { %v1892_v57 = vmov 0  }
 0x7b3   : > { %v1696_v10 = vpop.f32.mrf.mxu1  ;;  %1789 = vset.pattern.permute.xlu1 %v1892_v57  ;;  %1790 = vset.pattern.permute.xlu0 %v1892_v57 }
 0x81a   : > { %v1117_v58 = vpop.xlane.xlu1 %1116 }
 0x81b   : > { %1811 = vrcp.f32 %v1117_v58 }
 0x828   : > { %v1812_v59 = vpop.eup %1811 }
 0x829   : > { %v1119_v60 = vmul.f32 %v1812_v59, %v1810_v52 }
 0x82b   : > { %v1120_v61 = vpack.c.bf16 %v1119_v60, %v1119_v60 }
 0x82d   : > { %1706 = vmatmul.mubr.msk.bf16.vlgmr.msra.gmra.mxu1 %vm588_vm2, %v1120_v61  ;;  %v1593_v61 = vld [vmem:[%s2253_s11] ss:$0 sm:$0xff] }
 0x82e   : > { %1719 = vmatprep.mubr.msk.bf16.mxu1 %vm1880_vm0, %v1879_v2  ;;  %1716 = vmatpush3.bf16.msra.mxu1 %v1793_v24 }
 0x82f   : > { %1717 = vmatprep.subr.bf16.mxu1 %v1879_v2 }
 0x832   : > { %1718 = vmatpush3.bf16.msra.mxu1 %v1794_v4 }
 0x833   : > { %1731 = vmatprep.subr.mxu1 %v1879_v2 }
 0x8ed   : > { %v1163_v0 = vpop.f32.mrf.mxu1 }
 0x8ee   : > { %v1169_v1 = vpack.c.bf16 %v1163_v0, %v1163_v0 }
 0x8ef   : > { %v1707_v3 = vpop.f32.mrf.mxu1 }
 0x8f0   : > { %1712 = vmatmul.mubr.msk.bf16.vlgmr.msra.gmra.mxu0 %vm588_vm2, %v1169_v1  ;;  %v583_v3 = vld [vmem:[%s2255_s13] sm:$0x1] }
 0x8f1   : > { %v1166_v5 = vpop.f32.mrf.mxu1  ;;  %1727 = vmatprep.mubr.msk.bf16.mxu0 %vm1880_vm0, %v1879_v2  ;;  %1724 = vmatpush3.bf16.msra.mxu0 %v1795_v34 }
 0x8f2   : > { %1725 = vmatprep.subr.bf16.mxu0 %v1879_v2  ;;  %v1411_v5 = vlaneseq }
 0x8f3   : > { %v1708_v6 = vpop.f32.mrf.mxu1 }
 0x8f4   : > { %v1412_v6 = vshrl.u32 %v1411_v5, 7 }
 0x8f5   : > { %1726 = vmatpush3.bf16.msra.mxu0 %v1796_v35 }
 0x9b0   : > { %v1210_v8 = vpop.f32.mrf.mxu0 }
 0x9b1   : > { %v1216_v9 = vadd.f32 %v1210_v8, %v1058_v55 }
 0x9b2   : > { %v1713_v13 = vpop.f32.mrf.mxu0 }
 0x9b3   : > { %v1223_v14 = vadd.f32 %v1582_v7, %v1216_v9  ;;  %v1413_v7 = vsub.s32 0, %v1412_v6 }
 0x9b4   : > { %v1213_v15 = vpop.f32.mrf.mxu0 }
 0x9b5   : > { %v1224_v16 = vadd.f32 %v1223_v14, %v493_v11 }
 0x9b6   : > { %v1714_v17 = vpop.f32.mrf.mxu0 }
 0x9b7   : > { %v1225_v18 = vsel %vm517_vm1, %v1224_v16, 0.0 }
 0x9b8   : > { %1226 = vadd.xlane.f32.xlu1 %v1225_v18 }
 0xa41   : > { %v1227_v19 = vpop.xlane.xlu1 %1226 }
 0xa42   : > { %v1229_v20 = vmul.f32 0.03125, %v1227_v19 }
 0xa44   : > { %v1230_v21 = vsub.f32 %v1224_v16, %v1229_v20 }
 0xa46   : > { %v1231_v22 = vmul.f32 %v1230_v21, %v1230_v21 }
 0xa48   : > { %v1232_v23 = vsel %vm517_vm1, %v1231_v22, 0.0 }
 0xa49   : > { %1233 = vadd.xlane.f32.xlu1 %v1232_v23 }
 0xad2   : > { %v1234_v25 = vpop.xlane.xlu1 %1233 }
 0xad3   : > { %v1235_v26 = vmul.f32 0.03125, %v1234_v25 }
 0xad5   : > { %v1236_v27 = vadd.f32 1e-05, %v1235_v26 }
 0xad7   : > { %1813 = vrsqrt.f32 %v1236_v27 }
 0xae4   : > { %v1814_v28 = vpop.eup %1813 }
 0xae5   : > { %v1238_v12 = vmul.f32 %v1814_v28, %v1230_v21 }
 0xae7   : > { %v1245_v31 = vmul.f32 %v1583_v29, %v1238_v12 }
 0xae9   : > { %v1252_v32 = vadd.f32 %v1584_v30, %v1245_v31 }
 0xaeb   : > { %v1253_v33 = vpack.c.bf16 %v1252_v32, %v1252_v32 }
 0xaed   : > { %1720 = vmatmul.mubr.msk.bf16.vlgmr.msra.gmra.mxu1 %vm517_vm1, %v1253_v33 }
 0xaee   : > { %1733 = vmatprep.mubr.msk.f32.mxu1 %vm1880_vm0, %v1879_v2  ;;  %v1589_v2 = vld [vmem:[%s2250_s8] ss:$0 sm:$0xff] }
 0xbad   : > { %v1309_v37 = vpop.f32.mrf.mxu1 }
 0xbae   : > { %v1310_v38 = vadd.f32 %v1585_v36, %v1309_v37 }
 0xbaf   : > { %v1721_v39 = vpop.f32.mrf.mxu1 }
 0xbb0   : > { %v1315_v40 = vmax.f32 %v1310_v38, 0.0 }
 0xbb1   : > { %v1312_v41 = vpop.f32.mrf.mxu1 }
 0xbb2   : > { %v1316_v42 = vpack.c.bf16 %v1315_v40, %v1315_v40 }
 0xbb3   : > { %v1722_v43 = vpop.f32.mrf.mxu1 }
 0xbb4   : > { %1728 = vmatmul.mubr.msk.bf16.vlgmr.msra.gmra.mxu0 %vm517_vm1, %v1316_v42 }
 0xc74   : > { %v1372_v44 = vpop.f32.mrf.mxu0 }
 0xc75   : > { %v1373_v45 = vadd.f32 %v1589_v2, %v1372_v44 }
 0xc76   : > { %v1729_v46 = vpop.f32.mrf.mxu0 }
 0xc77   : > { %v1378_v47 = vadd.f32 %v1373_v45, %v1252_v32 }
 0xc78   : > { %v1375_v48 = vpop.f32.mrf.mxu0 }
 0xc79   : > { %v1379_v49 = vsel %vm517_vm1, %v1378_v47, 0.0 }
 0xc7a   : > { %1380 = vadd.xlane.f32.xlu1 %v1379_v49  ;;  %v1730_v50 = vpop.f32.mrf.mxu0 }
 0xd03   : > { %v1381_v51 = vpop.xlane.xlu1 %1380 }
 0xd04   : > { %v1382_v52 = vmul.f32 0.03125, %v1381_v51 }
 0xd06   : > { %v1383_v53 = vsub.f32 %v1378_v47, %v1382_v52 }
 0xd08   : > { %v1384_v54 = vmul.f32 %v1383_v53, %v1383_v53 }
 0xd0a   : > { %v1385_v55 = vsel %vm517_vm1, %v1384_v54, 0.0 }
 0xd0b   : > { %1386 = vadd.xlane.f32.xlu1 %v1385_v55 }
 0xd1c   : > { %1408 = vperm.xlu1 %1789, %v584_v56  }
 0xd94   : > { %v1387_v10 = vpop.xlane.xlu1 %1386 }
 0xd95   : > { %v1388_v58 = vmul.f32 0.03125, %v1387_v10 }
 0xd97   : > { %v1389_v59 = vadd.f32 1e-05, %v1388_v58 }
 0xd98   : > { %v1409_v8 = vpop.permute.xlu1 %1408 }
 0xd99   : > { %1815 = vrsqrt.f32 %v1389_v59  ;;  %v1414_v9 = vrot.slane %v1409_v8, %v1413_v7 }
 0xda6   : > { %v1816_v60 = vpop.eup %1815 }
 0xda7   : > { %v1391_v62 = vmul.f32 %v1816_v60, %v1383_v53 }
 0xda9   : > { %v1398_v0 = vmul.f32 %v1593_v61, %v1391_v62 }
 0xdab   : > { %v1405_v1 = vadd.f32 %v1594_v63, %v1398_v0 }
 0xdad   : > { %1732 = vmatpush3.xpose.msk.msra.mxu1 %vm517_vm1, %v1405_v1 }
 0xdb0   : > { %1734 = vmatmul.mubr.msk.f32.vlgmr.msra.gmra.mxu1 %vm517_vm1, %v583_v3 }
 0xe70   : > { %v1487_v11 = vpop.f32.mrf.mxu1 }
 0xe71   : > { %v1488_v13 = vadd.f32 %v1487_v11, %v1414_v9 }
 0xe72   : > { %v1735_v14 = vpop.f32.mrf.mxu1 }
 0xe73   : > { %1492 = vst.msk [vmem:[%s486_s16] sm:$0x1] %vm1491_vm4, %v1488_v13 }
 0xe74   : > { %1830 = shalt.err (!%p1827_p3)
}
 0xe75   : > { %s1831_s0 = scalar_lea.hbm %s2207_s19, 16  ;;  %s1835_s16 = scalar_lea.hbm %s2257_s15, 32 }
 0xe76   : > { %p1832_p4 = scmp.ne.s32.totalorder %s2207_s19, %s1831_s0  ;;  %p1836_p9 = scmp.lt.s32.totalorder %s2207_s19, %s2257_s15 }
 0xe77   : > { %p1837_p10 = scmp.lt.s32.totalorder %s1835_s16, %s1831_s0 }
 0xe78   : > { %p1833_p7 = pnand %p1832_p4, %p2015_p5 }
 0xe79   : > { %p1838_p11 = por %p1837_p10, %p1836_p9 }
 0xe7a   : > { %p1834_p8 = pneg %p1833_p7 }
 0xe7c   : > { %p1839_p12 = pnand %p1838_p11, %p1834_p8 }
 0xe7e   : > { %1842 = shalt.err (!%p1839_p12)
}
 0xe7f   : > { %1736 = dma.vmem_to_hbm [thread:$0]  (%p2015_p5), %s1507_s17, 16, %s2207_s19, %s1494_s24  }
 0xe80 PF: > { %p1742_p13 = scmp.ge.s32.totalorder %s1877_s23, 2  ;;  %s1518_s1 = sand.u32 1, %s1865_s20  }
 0xe81   : > { %s1519_s2 = scalar_lea.sflag [#allocation4], %s1518_s1 }
 0xe82   : > { %p1739_p0 = pnand %p1742_p13, %p2019_p6 }
 0xe84   : > { %p1740_p1 = pneg %p1739_p0 }
 0xe86   : > { %1860 = dma.done.wait (%p1740_p1), %s1519_s2, 16  }
 0xe87   : > { %1862 = vsyncadd (%p1740_p1), %s1519_s2, 4294967280  ;;  %p27_p2 = scmp.ge.s32.totalorder %s2002_s25, 4   ;;  %s2268_s20 = smov %s1869_s21 }
 0xe88   : > { %s2269_s21 = smov %s1873_s22  ;;  %s2270_s22 = smov %s2013_s28 }
 0xe89   : > { %s2271_s23 = smov %s2002_s25  ;;  %29 = sbr.rel (!%p27_p2) target bundleno = 8 (0x8), region = 115 }
 0xe8e   :  { %1523 = vsyncpa [#allocation4], 1 }
 0xe8f   :  { %1525 = vsyncpa [#allocation4 + $0x1], 1 }

// kernel: transformer_forward.2
= control target key start
LH: loop header
LB: loop body
LE: loop exit
PB: predicated region body
PF: predicated region fallthrough
CT: control target
= control target key end

     0   :  { %s1744_s29 = smov 0   ;;  %s1933_s0 = inlined_call_operand.vmem [shape: f32[2,8,32], index: 0, kind: input, shape index: {}]   ;;  %s1934_s1 = inlined_call_operand.vmem [shape: f32[8,32], index: 1, kind: input, shape index: {}]   ;;  %s1935_s2 = inlined_call_operand.vmem [shape: bf16[32,96], index: 2, kind: input, shape index: {}]   ;;  %s1936_s3 = inlined_call_operand.vmem [shape: f32[1,96], index: 3, kind: input, shape index: {}]   ;;  %s1937_s4 = inlined_call_operand.vmem [shape: bf16[32,32], index: 4, kind: input, shape index: {}]   ;;  %s1938_s5 = inlined_call_operand.vmem [shape: f32[1,32], index: 5, kind: input, shape index: {}]   ;;  %s1939_s6 = inlined_call_operand.vmem [shape: bf16[32,32], index: 6, kind: input, shape index: {}]   ;;  %s1940_s7 = inlined_call_operand.vmem [shape: f32[1,32], index: 7, kind: input, shape index: {}]   ;;  %s1941_s8 = inlined_call_operand.vmem [shape: bf16[32,32], index: 8, kind: input, shape index: {}]   ;;  %s1942_s9 = inlined_call_operand.vmem [shape: f32[1,32], index: 9, kind: input, shape index: {}]   ;;  %s1943_s10 = inlined_call_operand.vmem [shape: f32[1,32], index: 10, kind: input, shape index: {}]   ;;  %s1944_s11 = inlined_call_operand.vmem [shape: f32[1,32], index: 11, kind: input, shape index: {}]   ;;  %s1945_s12 = inlined_call_operand.vmem [shape: f32[1,32], index: 12, kind: input, shape index: {}]   ;;  %s1946_s13 = inlined_call_operand.vmem [shape: f32[1,32], index: 13, kind: input, shape index: {}]   ;;  %s1947_s14 = inlined_call_operand.vmem [shape: bf16[2,8,32], index: 14, kind: output, shape index: {}]  }
   0x1 LB: > { %s1434_s30 = sadd.s32 4294967295, %s1654_s29   ;;  %p1438_p0 = scmp.ge.s32.totalorder %s1654_s29, 1  ;;  %s1654_s29 = sphi %s1744_s29, %s24_s29  }
   0x2   : > { %p411_p1 = scmp.lt.s32.totalorder %s1654_s29, 3 }
   0x4   : > { %p412_p2 = pnand %p1438_p0, %p411_p1 }
   0x5   : > { %p455_p3 = scmp.lt.s32.totalorder (!%p412_p2), %s1434_s30, 1  ;;  %s1658_s27 = smov (!%p412_p2), 96  }
   0x6   : > { %415 = sbr.rel (%p412_p2) target bundleno = 3491 (0xda3), region = 76  ;;  %s1659_s28 = smov (!%p412_p2), 120  }
   0x7   : > { %s1660_s15 = smov (!%p412_p2), 88   ;;  %s1661_s16 = smov (!%p412_p2), 64  }
   0x8   : > { %s1662_s17 = smov (!%p412_p2), 56   ;;  %s1663_s18 = smov (!%p412_p2), 112  }
   0x9   : > { %s1666_s25 = smov (!%p412_p2), 104   ;;  %s1667_s26 = smov (!%p412_p2), 48  }
   0xb   : > { %v1622_v0 = vld [vmem:[%s1935_s2 + $0x8] sm:$0xff]   ;;  %v1656_v1 = vmov 0.0   ;;  %v1623_v2 = vld [vmem:[%s1935_s2] sm:$0xff]   ;;  %vm1657_vm0 = vmmov 0   ;;  %s1949_s30 = smov (!%p455_p3, %s1434_s30), 1  ;;  %vm491_vm1 = vcmask 261120  }
   0xc   : > { %1505 = vmatprep.subr.bf16.mxu0 %v1656_v1  ;;  %1513 = vmatprep.subr.bf16.mxu1 %v1656_v1  ;;  %s1439_s19 = sshll.u32 %s1949_s30, 3  ;;  %v465_v3 = vld [vmem:[%s1934_s1] sm:$0xff]  ;;  %vm560_vm2 = vcmask 64512   ;;  %vm624_vm3 = vcmask 1043456   ;;  %vm1379_vm4 = vcmask 257024  }
   0xd   : > { %1506 = vmatpush3.bf16.msra.mxu0 %v1622_v0  ;;  %1509 = vmatprep.mubr.msk.bf16.mxu0 %vm1657_vm0, %v1656_v1  ;;  %s458_s24 = scalar_lea.vmem %s1933_s0, %s1439_s19  ;;  %v1441_v7 = vld [vmem:[%s1936_s3] ss:$0 sm:$0xff]  ;;  %s1664_s19 = smov 80   ;;  %v539_v55 = vld [vmem:[%s1937_s4 + $0x4] sm:$0xf] }
   0xe   : > { %1507 = vmatprep.subr.bf16.mxu0 %v1656_v1  ;;  %1515 = vmatprep.mubr.msk.bf16.mxu1 %vm1657_vm0, %v1656_v1  ;;  %v464_v4 = vld [vmem:[%s458_s24] sm:$0xff]  ;;  %v785_v56 = vsel %vm624_vm3, %v539_v55, 0  ;;  %s1665_s24 = smov 72  }
   0xf   : > { %v1775_v5 = vadd.f32 %v465_v3, %v464_v4  ;;  %v538_v53 = vld [vmem:[%s1937_s4] sm:$0xf] }
  0x10   : > { %v831_v54 = vsel %vm624_vm3, %v538_v53, 0 }
  0x11   : > { %1508 = vmatpush3.bf16.msra.mxu0 %v1623_v2  ;;  %v467_v6 = vpack.c.bf16 %v1775_v5, %v1775_v5 }
  0x12   : > { %1519 = vmatprep.subr.bf16.mxu0 %v1656_v1 }
  0x14   : > { %1510 = vmatmul.mubr.msk.bf16.vlgmr.msra.gmra.mxu0 %vm491_vm1, %v467_v6 }
  0x15   : > { %1521 = vmatprep.mubr.msk.bf16.mxu0 %vm1657_vm0, %v1656_v1 }
  0xd4   : > { %v529_v8 = vpop.f32.mrf.mxu0 }
  0xd5   : > { %v530_v9 = vadd.f32 %v1441_v7, %v529_v8 }
  0xd6   : > { %v1511_v10 = vpop.f32.mrf.mxu0 }
  0xd7   : > { %v535_v11 = vmul.f32 0.35355338, %v530_v9  ;;  %v1785_v12 = vpack.c.bf16 %v530_v9, %v530_v9 }
  0xd8   : > { %v532_v13 = vpop.f32.mrf.mxu0 }
  0xd9   : > { %v1787_v14 = vpack.c.bf16 %v535_v11, %v535_v11  ;;  %558 = vrot.lane.b32.xlu0 %v1785_v12, %s1658_s27 }
  0xda   : > { %v1512_v15 = vpop.f32.mrf.mxu0 }
  0xdb   : > { %670 = vrot.lane.b32.xlu1 %v1787_v14, %s1659_s28 }
  0xdd   : > { %672 = vrot.lane.b32.xlu0 %v1785_v12, %s1660_s15  ;;  %s1668_s15 = smov 40  }
 0x14b   : > { %v559_v16 = vpop.permute.xlu0 %558 }
 0x14c   : > { %v565_v17 = vsel %vm560_vm2, %v559_v16, 0 }
 0x14d   : > { %1514 = vmatpush3.bf16.xpose.msra.mxu1 %v565_v17  ;;  %v671_v20 = vpop.permute.xlu1 %670 }
 0x14e   : > { %1525 = vmatprep.subr.bf16.mxu1 %v1656_v1 }
 0x14f   : > { %v673_v18 = vpop.permute.xlu0 %672 }
 0x150   : > { %v678_v19 = vsel %vm560_vm2, %v673_v18, 0 }
 0x154   : > { %1516 = vmatmul.mubr.msk.bf16.vlgmr.msra.gmra.mxu1 %vm560_vm2, %v1787_v14 }
 0x155   : > { %1526 = vmatpush3.bf16.xpose.msra.mxu1 %v678_v19  ;;  %1527 = vmatprep.mubr.msk.bf16.mxu1 %vm1657_vm0, %v1656_v1 }
 0x156   : > { %1537 = vmatprep.subr.bf16.mxu1 %v1656_v1 }
 0x15c   : > { %1528 = vmatmul.mubr.msk.bf16.vlgmr.msra.gmra.mxu1 %vm560_vm2, %v671_v20 }
 0x15d   : > { %1539 = vmatprep.mubr.msk.bf16.mxu1 %vm1657_vm0, %v1656_v1  ;;  %1538 = vmatpush3.bf16.msra.mxu1 %v785_v56 }
 0x15e   : > { %1549 = vmatprep.subr.bf16.mxu1 %v1656_v1 }
 0x214   : > { %v601_v21 = vpop.f32.mrf.mxu1 }
 0x215   : > { %v607_v22 = vsel %vm560_vm2, %v601_v21, -inf }
 0x216   : > { %608 = vmax.xlane.f32.xlu1 %v607_v22  ;;  %v1517_v23 = vpop.f32.mrf.mxu1 }
 0x218   : > { %v604_v24 = vpop.f32.mrf.mxu1 }
 0x21a   : > { %v1518_v25 = vpop.f32.mrf.mxu1 }
 0x21c   : > { %v714_v26 = vpop.f32.mrf.mxu1 }
 0x21d   : > { %v720_v27 = vsel %vm560_vm2, %v714_v26, -inf }
 0x21e   : > { %721 = vmax.xlane.f32.xlu0 %v720_v27  ;;  %v1529_v28 = vpop.f32.mrf.mxu1 }
 0x220   : > { %v717_v29 = vpop.f32.mrf.mxu1 }
 0x222   : > { %v1530_v30 = vpop.f32.mrf.mxu1 }
 0x29f   : > { %v609_v31 = vpop.xlane.xlu1 %608 }
 0x2a0   : > { %v610_v32 = vsub.f32 %v601_v21, %v609_v31 }
 0x2a2   : > { %v611_v33 = vmul.f32 1.442695, %v610_v32 }
 0x2a4   : > { %1628 = vpow2.f32 %v611_v33 }
 0x2a7   : > { %v722_v34 = vpop.xlane.xlu0 %721 }
 0x2a8   : > { %v723_v35 = vsub.f32 %v714_v26, %v722_v34 }
 0x2aa   : > { %v724_v36 = vmul.f32 1.442695, %v723_v35 }
 0x2ac   : > { %1630 = vpow2.f32 %v724_v36 }
 0x2b1   : > { %v1629_v37 = vpop.eup %1628 }
 0x2b2   : > { %v613_v38 = vsel %vm560_vm2, %v1629_v37, 0.0 }
 0x2b3   : > { %614 = vadd.xlane.f32.xlu0 %v613_v38 }
 0x2b9   : > { %v1631_v39 = vpop.eup %1630 }
 0x2ba   : > { %v726_v40 = vsel %vm560_vm2, %v1631_v39, 0.0 }
 0x2bb   : > { %727 = vadd.xlane.f32.xlu1 %v726_v40 }
 0x2c9   : > { %619 = vrot.lane.b32.xlu0 %v1785_v12, %s1661_s16 }
 0x2cc   : > { %732 = vrot.lane.b32.xlu1 %v1785_v12, %s1662_s17 }
 0x2cd   : > { %873 = vrot.lane.b32.xlu0 %v1787_v14, %s1663_s18 }
 0x2d0   : > { %875 = vrot.lane.b32.xlu1 %v1785_v12, %s1664_s19 }
 0x33c   : > { %v615_v41 = vpop.xlane.xlu0 %614 }
 0x33d   : > { %1632 = vrcp.f32 %v615_v41 }
 0x340   : > { %v620_v42 = vpop.permute.xlu0 %619 }
 0x341   : > { %v626_v43 = vsel %vm624_vm3, %v620_v42, 0 }
 0x342   : > { %1520 = vmatpush3.bf16.msra.mxu0 %v626_v43 }
 0x343   : > { %1531 = vmatprep.subr.bf16.mxu0 %v1656_v1 }
 0x344   : > { %v728_v44 = vpop.xlane.xlu1 %727  ;;  %v874_v7 = vpop.permute.xlu0 %873 }
 0x345   : > { %1634 = vrcp.f32 %v728_v44 }
 0x348   : > { %v733_v47 = vpop.permute.xlu1 %732 }
 0x349   : > { %v738_v49 = vsel %vm624_vm3, %v733_v47, 0 }
 0x34a   : > { %v1633_v45 = vpop.eup %1632 }
 0x34b   : > { %v617_v46 = vmul.f32 %v1633_v45, %v1629_v37  ;;  %v540_v37 = vld [vmem:[%s1937_s4 + $0x8] sm:$0xf] }
 0x34c   : > { %v876_v62 = vpop.permute.xlu1 %875  ;;  %v988_v38 = vsel %vm624_vm3, %v540_v37, 0  ;;  %v1460_v37 = vld [vmem:[%s1940_s7] ss:$0 sm:$0xff] }
 0x34d   : > { %v618_v48 = vpack.c.bf16 %v617_v46, %v617_v46  ;;  %v881_v3 = vsel %vm560_vm2, %v876_v62, 0 }
 0x34f   : > { %1522 = vmatmul.mubr.msk.bf16.vlgmr.msra.gmra.mxu0 %vm560_vm2, %v618_v48 }
 0x350   : > { %1532 = vmatpush3.bf16.msra.mxu0 %v738_v49  ;;  %1533 = vmatprep.mubr.msk.bf16.mxu0 %vm1657_vm0, %v1656_v1 }
 0x351   : > { %1543 = vmatprep.subr.bf16.mxu0 %v1656_v1 }
 0x352   : > { %v1635_v50 = vpop.eup %1634 }
 0x353   : > { %v730_v51 = vmul.f32 %v1635_v50, %v1631_v39 }
 0x355   : > { %v731_v52 = vpack.c.bf16 %v730_v51, %v730_v51 }
 0x357   : > { %1534 = vmatmul.mubr.msk.bf16.vlgmr.msra.gmra.mxu0 %vm560_vm2, %v731_v52 }
 0x358   : > { %1545 = vmatprep.mubr.msk.bf16.mxu0 %vm1657_vm0, %v1656_v1  ;;  %1544 = vmatpush3.bf16.msra.mxu0 %v831_v54 }
 0x359   : > { %1555 = vmatprep.subr.bf16.mxu0 %v1656_v1 }
 0x40f   : > { %v662_v57 = vpop.f32.mrf.mxu0 }
 0x410   : > { %v668_v58 = vpack.c.bf16 %v662_v57, %v662_v57  ;;  %v541_v57 = vld [vmem:[%s1937_s4 + $0xc] sm:$0xf] }
 0x411   : > { %v1523_v59 = vpop.f32.mrf.mxu0 }
 0x412   : > { %1546 = vmatmul.mubr.msk.bf16.vlgmr.msra.gmra.mxu0 %vm560_vm2, %v668_v58  ;;  %v1146_v58 = vsel %vm624_vm3, %v541_v57, 0 }
 0x413   : > { %v665_v60 = vpop.f32.mrf.mxu0  ;;  %1557 = vmatprep.mubr.msk.bf16.mxu0 %vm1657_vm0, %v1656_v1 }
 0x415   : > { %v1524_v61 = vpop.f32.mrf.mxu0 }
 0x417   : > { %v774_v63 = vpop.f32.mrf.mxu0 }
 0x418   : > { %v780_v0 = vpack.c.bf16 %v774_v63, %v774_v63 }
 0x419   : > { %v1535_v2 = vpop.f32.mrf.mxu0 }
 0x41a   : > { %1540 = vmatmul.mubr.msk.bf16.vlgmr.msra.gmra.mxu1 %vm560_vm2, %v780_v0 }
 0x41b   : > { %1550 = vmatpush3.bf16.xpose.msra.mxu1 %v881_v3  ;;  %v777_v4 = vpop.f32.mrf.mxu0  ;;  %1551 = vmatprep.mubr.msk.bf16.mxu1 %vm1657_vm0, %v1656_v1 }
 0x41c   : > { %1561 = vmatprep.subr.bf16.mxu1 %v1656_v1 }
 0x41d   : > { %v1536_v6 = vpop.f32.mrf.mxu0 }
 0x422   : > { %1552 = vmatmul.mubr.msk.bf16.vlgmr.msra.gmra.mxu1 %vm560_vm2, %v874_v7 }
 0x423   : > { %1563 = vmatprep.mubr.msk.bf16.mxu1 %vm1657_vm0, %v1656_v1  ;;  %1562 = vmatpush3.bf16.msra.mxu1 %v988_v38 }
 0x424   : > { %1573 = vmatprep.subr.bf16.mxu1 %v1656_v1 }
 0x4d2   : > { %v867_v8 = vpop.f32.mrf.mxu0 }
 0x4d4   : > { %v1547_v9 = vpop.f32.mrf.mxu0 }
 0x4d5   : > { %v1457_v9 = vld [vmem:[%s1938_s5] ss:$0 sm:$0xff] }
 0x4d6   : > { %v870_v10 = vpop.f32.mrf.mxu0 }
 0x4d8   : > { %v1548_v11 = vpop.f32.mrf.mxu0 }
 0x4da   : > { %v821_v13 = vpop.f32.mrf.mxu1 }
 0x4db   : > { %v1842_v15 = vadd.f32 %v867_v8, %v821_v13 }
 0x4dc   : > { %v1541_v16 = vpop.f32.mrf.mxu1 }
 0x4de   : > { %v824_v17 = vpop.f32.mrf.mxu1 }
 0x4e0   : > { %v1542_v18 = vpop.f32.mrf.mxu1 }
 0x4e2   : > { %v917_v19 = vpop.f32.mrf.mxu1 }
 0x4e3   : > { %v923_v20 = vsel %vm560_vm2, %v917_v19, -inf }
 0x4e4   : > { %924 = vmax.xlane.f32.xlu1 %v923_v20  ;;  %v1553_v21 = vpop.f32.mrf.mxu1 }
 0x4e6   : > { %v920_v22 = vpop.f32.mrf.mxu1 }
 0x4e8   : > { %v1554_v23 = vpop.f32.mrf.mxu1 }
 0x4f5   : > { %1033 = vrot.lane.b32.xlu1 %v1785_v12, %s1665_s24 }
 0x4f9   : > { %1031 = vrot.lane.b32.xlu1 %v1787_v14, %s1666_s25 }
 0x56d   : > { %v925_v24 = vpop.xlane.xlu1 %924 }
 0x56e   : > { %v926_v25 = vsub.f32 %v917_v19, %v925_v24 }
 0x570   : > { %v927_v26 = vmul.f32 1.442695, %v926_v25  ;;  %v1624_v25 = vld [vmem:[%s1939_s6 + $0x8] sm:$0xff]  }
 0x571   : > { %v1034_v33 = vpop.permute.xlu1 %1033 }
 0x572   : > { %1636 = vpow2.f32 %v927_v26  ;;  %v1039_v35 = vsel %vm560_vm2, %v1034_v33, 0 }
 0x575   : > { %v1032_v36 = vpop.permute.xlu1 %1031 }
 0x57f   : > { %v1637_v27 = vpop.eup %1636 }
 0x580   : > { %v929_v28 = vsel %vm560_vm2, %v1637_v27, 0.0 }
 0x581   : > { %930 = vadd.xlane.f32.xlu0 %v929_v28 }
 0x597   : > { %935 = vrot.lane.b32.xlu0 %v1785_v12, %s1667_s26  ;;  %s1440_s26 = sshll.u32 %s1949_s30, 2 }
 0x60a   : > { %v931_v29 = vpop.xlane.xlu0 %930 }
 0x60b   : > { %1638 = vrcp.f32 %v931_v29 }
 0x60e   : > { %v936_v30 = vpop.permute.xlu0 %935 }
 0x60f   : > { %v941_v31 = vsel %vm624_vm3, %v936_v30, 0  ;;  %v1458_v30 = vld [vmem:[%s1943_s10] ss:$0 sm:$0xff] }
 0x610   : > { %1556 = vmatpush3.bf16.msra.mxu0 %v941_v31 }
 0x611   : > { %1567 = vmatprep.subr.bf16.mxu0 %v1656_v1 }
 0x618   : > { %v1639_v14 = vpop.eup %1638 }
 0x619   : > { %v933_v32 = vmul.f32 %v1639_v14, %v1637_v27  ;;  %v1459_v14 = vld [vmem:[%s1944_s11] ss:$0 sm:$0xff] }
 0x61b   : > { %v934_v34 = vpack.c.bf16 %v933_v32, %v933_v32 }
 0x61d   : > { %1558 = vmatmul.mubr.msk.bf16.vlgmr.msra.gmra.mxu0 %vm560_vm2, %v934_v34 }
 0x61e   : > { %1568 = vmatpush3.bf16.xpose.msra.mxu0 %v1039_v35  ;;  %1569 = vmatprep.mubr.msk.bf16.mxu0 %vm1657_vm0, %v1656_v1  ;;  %v1626_v35 = vld [vmem:[%s1941_s8 + $0x8] sm:$0xff]  }
 0x61f   : > { %1579 = vmatprep.subr.bf16.mxu0 %v1656_v1 }
 0x625   : > { %1570 = vmatmul.mubr.msk.bf16.vlgmr.msra.gmra.mxu0 %vm560_vm2, %v1032_v36  ;;  %v1627_v36 = vld [vmem:[%s1941_s8] sm:$0xff]  }
 0x626   : > { %1581 = vmatprep.mubr.msk.bf16.mxu0 %vm1657_vm0, %v1656_v1  ;;  %1580 = vmatpush3.bf16.msra.mxu0 %v1146_v58 }
 0x627   : > { %1593 = vmatprep.subr.bf16.mxu0 %v1656_v1 }
 0x6dd   : > { %v977_v39 = vpop.f32.mrf.mxu0 }
 0x6de   : > { %v983_v40 = vpack.c.bf16 %v977_v39, %v977_v39 }
 0x6df   : > { %v1559_v41 = vpop.f32.mrf.mxu0 }
 0x6e0   : > { %1564 = vmatmul.mubr.msk.bf16.vlgmr.msra.gmra.mxu1 %vm560_vm2, %v983_v40 }
 0x6e1   : > { %v980_v42 = vpop.f32.mrf.mxu0  ;;  %1575 = vmatprep.mubr.msk.bf16.mxu1 %vm1657_vm0, %v1656_v1 }
 0x6e3   : > { %v1560_v43 = vpop.f32.mrf.mxu0 }
 0x6e5   : > { %v1075_v44 = vpop.f32.mrf.mxu0 }
 0x6e6   : > { %v1081_v45 = vsel %vm560_vm2, %v1075_v44, -inf }
 0x6e7   : > { %1082 = vmax.xlane.f32.xlu0 %v1081_v45  ;;  %v1571_v46 = vpop.f32.mrf.mxu0 }
 0x6e9   : > { %v1078_v47 = vpop.f32.mrf.mxu0 }
 0x6eb   : > { %v1572_v48 = vpop.f32.mrf.mxu0 }
 0x6fd   : > { %1093 = vrot.lane.b32.xlu0 %v1785_v12, %s1668_s15  ;;  %s462_s15 = scalar_lea.vmem %s1947_s14, %s1440_s26 }
 0x770   : > { %v1083_v49 = vpop.xlane.xlu0 %1082 }
 0x771   : > { %v1084_v50 = vsub.f32 %v1075_v44, %v1083_v49 }
 0x773   : > { %v1085_v51 = vmul.f32 1.442695, %v1084_v50 }
 0x774   : > { %v1094_v52 = vpop.permute.xlu0 %1093 }
 0x775   : > { %1640 = vpow2.f32 %v1085_v51  ;;  %v1099_v53 = vsel %vm624_vm3, %v1094_v52, 0 }
 0x776   : > { %1574 = vmatpush3.bf16.msra.mxu1 %v1099_v53 }
 0x777   : > { %1585 = vmatprep.subr.bf16.mxu1 %v1656_v1 }
 0x782   : > { %v1641_v54 = vpop.eup %1640 }
 0x783   : > { %v1087_v55 = vsel %vm560_vm2, %v1641_v54, 0.0 }
 0x784   : > { %1088 = vadd.xlane.f32.xlu1 %v1087_v55 }
 0x7a0   : > { %v1024_v56 = vpop.f32.mrf.mxu1 }
 0x7a1   : > { %v1030_v12 = vadd.f32 %v1024_v56, %v1842_v15 }
 0x7a2   : > { %v1565_v59 = vpop.f32.mrf.mxu1 }
 0x7a4   : > { %v1027_v60 = vpop.f32.mrf.mxu1 }
 0x7a5   : > { %v1468_v60 = vld [vmem:[%s1945_s12] ss:$0 sm:$0xff] }
 0x7a6   : > { %v1566_v61 = vpop.f32.mrf.mxu1 }
 0x80d   : > { %v1089_v62 = vpop.xlane.xlu1 %1088 }
 0x80e   : > { %1642 = vrcp.f32 %v1089_v62  ;;  %v1469_v62 = vld [vmem:[%s1946_s13] ss:$0 sm:$0xff] }
 0x81b   : > { %v1643_v63 = vpop.eup %1642 }
 0x81c   : > { %v1091_v0 = vmul.f32 %v1643_v63, %v1641_v54 }
 0x81e   : > { %v1092_v2 = vpack.c.bf16 %v1091_v0, %v1091_v0 }
 0x820   : > { %1576 = vmatmul.mubr.msk.bf16.vlgmr.msra.gmra.mxu1 %vm560_vm2, %v1092_v2 }
 0x821   : > { %1589 = vmatprep.mubr.msk.bf16.mxu1 %vm1657_vm0, %v1656_v1  ;;  %1586 = vmatpush3.bf16.msra.mxu1 %v1624_v25 }
 0x822   : > { %1587 = vmatprep.subr.bf16.mxu1 %v1656_v1 }
 0x8e0   : > { %v1135_v3 = vpop.f32.mrf.mxu1 }
 0x8e1   : > { %v1141_v4 = vpack.c.bf16 %v1135_v3, %v1135_v3 }
 0x8e2   : > { %v1577_v6 = vpop.f32.mrf.mxu1 }
 0x8e3   : > { %1582 = vmatmul.mubr.msk.bf16.vlgmr.msra.gmra.mxu0 %vm560_vm2, %v1141_v4 }
 0x8e4   : > { %v1138_v7 = vpop.f32.mrf.mxu1  ;;  %1597 = vmatprep.mubr.msk.bf16.mxu0 %vm1657_vm0, %v1656_v1  ;;  %1594 = vmatpush3.bf16.msra.mxu0 %v1626_v35 }
 0x8e5   : > { %1595 = vmatprep.subr.bf16.mxu0 %v1656_v1  ;;  %v1464_v1 = vld [vmem:[%s1942_s9] ss:$0 sm:$0xff] }
 0x8e6   : > { %v1578_v8 = vpop.f32.mrf.mxu1 }
 0x8e8   : > { %1596 = vmatpush3.bf16.msra.mxu0 %v1627_v36 }
 0x9a3   : > { %v1182_v10 = vpop.f32.mrf.mxu0 }
 0x9a4   : > { %v1188_v11 = vadd.f32 %v1182_v10, %v1030_v12 }
 0x9a5   : > { %v1583_v13 = vpop.f32.mrf.mxu0 }
 0x9a6   : > { %v1195_v15 = vadd.f32 %v1457_v9, %v1188_v11 }
 0x9a7   : > { %v1185_v16 = vpop.f32.mrf.mxu0 }
 0x9a8   : > { %v1196_v17 = vadd.f32 %v1195_v15, %v1775_v5  ;;  %v1625_v5 = vld [vmem:[%s1939_s6] sm:$0xff]  }
 0x9a9   : > { %v1584_v18 = vpop.f32.mrf.mxu0  ;;  %1588 = vmatpush3.bf16.msra.mxu1 %v1625_v5 }
 0x9aa   : > { %v1197_v19 = vsel %vm491_vm1, %v1196_v17, 0.0 }
 0x9ab   : > { %1198 = vadd.xlane.f32.xlu1 %v1197_v19 }
 0xa34   : > { %v1199_v20 = vpop.xlane.xlu1 %1198 }
 0xa35   : > { %v1201_v21 = vmul.f32 0.03125, %v1199_v20 }
 0xa37   : > { %v1202_v22 = vsub.f32 %v1196_v17, %v1201_v21 }
 0xa39   : > { %v1203_v23 = vmul.f32 %v1202_v22, %v1202_v22 }
 0xa3b   : > { %v1204_v24 = vsel %vm491_vm1, %v1203_v23, 0.0 }
 0xa3c   : > { %1205 = vadd.xlane.f32.xlu1 %v1204_v24 }
 0xac5   : > { %v1206_v26 = vpop.xlane.xlu1 %1205 }
 0xac6   : > { %v1207_v27 = vmul.f32 0.03125, %v1206_v26 }
 0xac8   : > { %v1208_v28 = vadd.f32 1e-05, %v1207_v27 }
 0xaca   : > { %1644 = vrsqrt.f32 %v1208_v28 }
 0xad7   : > { %v1645_v29 = vpop.eup %1644 }
 0xad8   : > { %v1210_v31 = vmul.f32 %v1645_v29, %v1202_v22 }
 0xada   : > { %v1217_v32 = vmul.f32 %v1458_v30, %v1210_v31 }
 0xadc   : > { %v1224_v33 = vadd.f32 %v1459_v14, %v1217_v32 }
 0xade   : > { %v1225_v34 = vpack.c.bf16 %v1224_v33, %v1224_v33 }
 0xae0   : > { %1590 = vmatmul.mubr.msk.bf16.vlgmr.msra.gmra.mxu1 %vm491_vm1, %v1225_v34 }
 0xba0   : > { %v1281_v38 = vpop.f32.mrf.mxu1 }
 0xba1   : > { %v1282_v39 = vadd.f32 %v1460_v37, %v1281_v38 }
 0xba2   : > { %v1591_v40 = vpop.f32.mrf.mxu1 }
 0xba3   : > { %v1287_v41 = vmax.f32 %v1282_v39, 0.0 }
 0xba4   : > { %v1284_v42 = vpop.f32.mrf.mxu1 }
 0xba5   : > { %v1288_v43 = vpack.c.bf16 %v1287_v41, %v1287_v41 }
 0xba6   : > { %v1592_v44 = vpop.f32.mrf.mxu1 }
 0xba7   : > { %1598 = vmatmul.mubr.msk.bf16.vlgmr.msra.gmra.mxu0 %vm491_vm1, %v1288_v43 }
 0xc67   : > { %v1344_v45 = vpop.f32.mrf.mxu0 }
 0xc68   : > { %v1345_v46 = vadd.f32 %v1464_v1, %v1344_v45 }
 0xc69   : > { %v1599_v47 = vpop.f32.mrf.mxu0 }
 0xc6a   : > { %v1350_v48 = vadd.f32 %v1345_v46, %v1224_v33 }
 0xc6b   : > { %v1347_v49 = vpop.f32.mrf.mxu0 }
 0xc6c   : > { %v1351_v50 = vsel %vm491_vm1, %v1350_v48, 0.0 }
 0xc6d   : > { %1352 = vadd.xlane.f32.xlu1 %v1351_v50  ;;  %v1600_v51 = vpop.f32.mrf.mxu0 }
 0xcf6   : > { %v1353_v52 = vpop.xlane.xlu1 %1352 }
 0xcf7   : > { %v1354_v53 = vmul.f32 0.03125, %v1353_v52 }
 0xcf9   : > { %v1355_v54 = vsub.f32 %v1350_v48, %v1354_v53 }
 0xcfb   : > { %v1356_v55 = vmul.f32 %v1355_v54, %v1355_v54 }
 0xcfd   : > { %v1357_v56 = vsel %vm491_vm1, %v1356_v55, 0.0 }
 0xcfe   : > { %1358 = vadd.xlane.f32.xlu1 %v1357_v56 }
 0xd87   : > { %v1359_v57 = vpop.xlane.xlu1 %1358 }
 0xd88   : > { %v1360_v12 = vmul.f32 0.03125, %v1359_v57 }
 0xd8a   : > { %v1361_v58 = vadd.f32 1e-05, %v1360_v12 }
 0xd8c   : > { %1646 = vrsqrt.f32 %v1361_v58 }
 0xd99   : > { %v1647_v59 = vpop.eup %1646 }
 0xd9a   : > { %v1363_v61 = vmul.f32 %v1647_v59, %v1355_v54 }
 0xd9c   : > { %v1370_v63 = vmul.f32 %v1468_v60, %v1363_v61 }
 0xd9e   : > { %v1377_v0 = vadd.f32 %v1469_v62, %v1370_v63 }
 0xda0   : > { %v1378_v2 = vpack.c.bf16 %v1377_v0, %v1377_v0 }
 0xda2   : > { %1380 = vst.msk [vmem:[%s462_s15] sm:$0xf] %vm1379_vm4, %v1378_v2 }
 0xda3 PF: > { %s24_s29 = sadd.s32 1, %s1654_s29  }
 0xda4   : > { %p21_p4 = scmp.ge.s32.totalorder %s24_s29, 4  }
 0xda6   :  { %23 = sbr.rel (!%p21_p4) target bundleno = 1 (0x1), region = 106 }

</bundles_post_ra>
